<compile_context>
chip_gen: v6e
topology: v6e:2x2x1
jax: 0.10.0
libtpu: 0.0.40
codegen_flags: <defaults>
</compile_context>

<pallas_src>
import functools

import jax
import jax.numpy as jnp
from jax.experimental import pallas as pl
from jax.experimental.pallas import tpu as pltpu


def _round_up(n, m):
    return ((n + m - 1) // m) * m


def mdn_kernel(x_ref,
               w1_ref, b1_ref, w2_ref, b2_ref, w3_ref, b3_ref, w4_ref, b4_ref,
               wh_ref, bh_ref,
               out_ref, *, og, ng):
    f32 = jnp.float32
    cdt = w1_ref.dtype     # hidden compute dtype (f32, or bf16 on the fast path)

    def hidden(h, w_ref, b_ref):
        # MXU accumulates in f32 internally; popping directly to `cdt` keeps
        # the bias-add + ReLU on `cdt` lanes (half the VPU passes for bf16 on
        # v6e/v7x) and removes the per-layer f32->bf16 cast pass.
        return jnp.maximum(
            jnp.dot(h, w_ref[...], preferred_element_type=cdt) + b_ref[...], 0.0)

    # Shared layers: Linear -> ReLU (x4).  nn.Dropout(0.25) is identity under
    # eval-mode forward semantics.
    # TODO(synk): training-mode stochastic dropout masking is not reproduced.
    # NOTE: with bf16 weights the f32 input is quantized to bf16 here as well.
    h = x_ref[...].astype(cdt)
    h = hidden(h, w1_ref, b1_ref)
    h = hidden(h, w2_ref, b2_ref)
    h = hidden(h, w3_ref, b3_ref)
    h = hidden(h, w4_ref, b4_ref)

    # Fused, lane-dense head: one (bb,128)x(128,128) matmul producing
    # [ mus | sigma_lin | pi_lin | zero-pad ]; epilogue math in f32.
    head = (jnp.dot(h, wh_ref[...], preferred_element_type=f32)
            + bh_ref[...])                                   # (bb, 128), f32
    col = jax.lax.broadcasted_iota(jnp.int32, head.shape, dimension=1)

    # Stable softplus(x) + 1e-6 on all columns (EUP slot has slack; selected
    # per column range below).  log(1+exp(-|x|)) kept over log1p for a
    # guaranteed Mosaic lowering path.
    sp = jnp.maximum(head, 0.0) + jnp.log(1.0 + jnp.exp(-jnp.abs(head))) + 1e-6

    # Masked softmax restricted to the pi columns [og+ng, og+2ng).  The mask is
    # two-sided so the zero-valued padded columns (head == 0 there) cannot
    # leak into the max / denominator.
    pi_mask = (col >= og + ng) & (col < og + 2 * ng)
    masked = jnp.where(pi_mask, head, -1e30)
    m = jnp.max(masked, axis=-1, keepdims=True)
    e = jnp.exp(masked - m)                                  # exactly 0 off the pi range
    denom = jnp.sum(e, axis=-1, keepdims=True)
    inv = 1.0 / denom                                        # one divide per row
    pis = e * inv                                            # broadcast multiply

    # mu cols: raw head; sigma cols: softplus; pi cols: softmax; pad cols: 0.
    out = jnp.where(col < og, head, jnp.where(col < og + ng, sp, pis))
    out_ref[...] = out.astype(out_ref.dtype)


def prepare_params(params, *, compute_dtype=jnp.bfloat16, lane_multiple=128):
    """One-time parameter preparation (call once, outside the hot path).

    - Zero-pads the 500-wide hidden layers to 512 and the 64-wide layer-4
      output to 128 (full lane tile).
    - Fuses the three head weights/biases into a single zero-padded
      (128, 128) matrix / (1, 128) bias.
    - Casts hidden weights+biases to `compute_dtype` (bf16 is the MXU-native
      fast path on every generation); the head bias stays f32 for the f32
      epilogue.
    """
    (w1, b1, w2, b2, w3, b3, w4, b4,
     wmu, bmu, wsig, bsig, wpi, bpi) = params

    def pad_to(a, rows, cols):
        return jnp.pad(a, ((0, rows - a.shape[0]), (0, cols - a.shape[1])))

    h1 = _round_up(w1.shape[1], lane_multiple)   # 500 -> 512
    h2 = _round_up(w2.shape[1], lane_multiple)   # 500 -> 512
    h3 = _round_up(w3.shape[1], lane_multiple)   # 500 -> 512
    h4 = _round_up(w4.shape[1], lane_multiple)   # 64  -> 128

    w1p = pad_to(w1, w1.shape[0], h1); b1p = pad_to(b1, 1, h1)
    w2p = pad_to(w2, h1, h2);          b2p = pad_to(b2, 1, h2)
    w3p = pad_to(w3, h2, h3);          b3p = pad_to(b3, 1, h3)
    w4p = pad_to(w4, h3, h4);          b4p = pad_to(b4, 1, h4)

    # Fused head [mu | sigma | pi], zero-padded to a full 128-lane tile.
    wh = jnp.concatenate([wmu, wsig, wpi], axis=1)           # (64, O*G + 2G)
    bh = jnp.concatenate([bmu, bsig, bpi], axis=1)           # (1,  O*G + 2G)
    hcols = _round_up(wh.shape[1], lane_multiple)             # -> 128
    whp = pad_to(wh, h4, hcols)                               # (128, 128)
    bhp = pad_to(bh, 1, hcols)                                # (1, 128)

    cast = lambda a: a.astype(compute_dtype)
    return (cast(w1p), cast(b1p), cast(w2p), cast(b2p),
            cast(w3p), cast(b3p), cast(w4p), cast(b4p),
            cast(whp), bhp.astype(jnp.float32))


def mdn_forward(x, prepared, *, output_dim, num_gaussians,
                batch_block=512, batch_align=128, vmem_limit_bytes=None):
    """Run the MDN forward pass with a batch-tiled Pallas kernel.

    `batch_block` is the main tuning knob (multiples of 128; try 512/1024 for
    large batches).  When the batch is large enough the grid is forced to have
    at least two steps so both v7x TensorCores get work.
    """
    B, D = x.shape
    og = output_dim * num_gaussians
    ng = num_gaussians
    out_cols = og + 2 * ng
    padded_cols = prepared[-2].shape[1]           # 128 (lane-dense head/output)

    bb = min(batch_block, B)
    if B >= 2 * batch_align:
        # >= 2 grid steps so the "parallel" batch axis can shard across the
        # two TensorCores on v7x; keep blocks batch_align-aligned.
        bb = min(bb, _round_up(pl.cdiv(B, 2), batch_align))
        bb = _round_up(bb, batch_align)
    grid_b = pl.cdiv(B, bb)
    B_pad = grid_b * bb
    assert grid_b == 1 or bb % 8 == 0, "batch block must be a multiple of 8 when tiling"
    if B_pad != B:
        x = jnp.pad(x, ((0, B_pad - B), (0, 0)))

    weights = prepared

    def rep_spec(a):
        # Replicated weights/biases: constant block index across the grid, so
        # Pallas only issues their HBM->VMEM DMA once (no per-step refetch).
        return pl.BlockSpec(a.shape, lambda i, nd=a.ndim: (0,) * nd)

    kernel = functools.partial(mdn_kernel, og=og, ng=ng)

    compiler_kwargs = dict(dimension_semantics=("parallel",))
    if vmem_limit_bytes is not None:
        compiler_kwargs["vmem_limit_bytes"] = vmem_limit_bytes

    out = pl.pallas_call(
        kernel,
        out_shape=jax.ShapeDtypeStruct((B_pad, padded_cols), jnp.float32),
        grid_spec=pltpu.PrefetchScalarGridSpec(
            num_scalar_prefetch=0,
            grid=(grid_b,),
            in_specs=[pl.BlockSpec((bb, D), lambda i: (i, 0))]
                     + [rep_spec(a) for a in weights],
            out_specs=pl.BlockSpec((bb, padded_cols), lambda i: (i, 0)),
        ),
        compiler_params=pltpu.CompilerParams(**compiler_kwargs),
    )(x, *weights)

    return out[:B, :out_cols]


def init_params(key, input_dim, output_dim, num_gaussians):
    """Deterministic synthetic parameters (PyTorch-like uniform fan-in init)."""
    dims = [
        (input_dim, 500), (500, 500), (500, 500), (500, 64),
        (64, output_dim * num_gaussians), (64, num_gaussians), (64, num_gaussians),
    ]
    params = []
    for (fan_in, fan_out) in dims:
        key, kw, kb = jax.random.split(key, 3)
        bound = 1.0 / (fan_in ** 0.5)
        w = jax.random.uniform(kw, (fan_in, fan_out), jnp.float32, -bound, bound)
        b = jax.random.uniform(kb, (1, fan_out), jnp.float32, -bound, bound)
        params.extend([w, b])
    return tuple(params)


def mdn_reference(x, params, *, output_dim, num_gaussians):
    """Plain-JAX reference for correctness checking (unpadded, unfused)."""
    (w1, b1, w2, b2, w3, b3, w4, b4,
     wmu, bmu, wsig, bsig, wpi, bpi) = params
    h = jnp.maximum(x @ w1 + b1, 0.0)
    h = jnp.maximum(h @ w2 + b2, 0.0)
    h = jnp.maximum(h @ w3 + b3, 0.0)
    h = jnp.maximum(h @ w4 + b4, 0.0)
    mus = h @ wmu + bmu
    sigmas = jax.nn.softplus(h @ wsig + bsig) + 1e-6
    pis = jax.nn.softmax(h @ wpi + bpi, axis=1)
    return jnp.concatenate([mus, sigmas, pis], axis=1)


if __name__ == "__main__":
    INPUT_DIM = 32
    OUTPUT_DIM = 3
    NUM_GAUSSIANS = 5
    BATCH = 16

    key = jax.random.PRNGKey(0)
    key, kx, kx2 = jax.random.split(key, 3)
    x = jax.random.normal(kx, (BATCH, INPUT_DIM), jnp.float32)
    params = init_params(key, INPUT_DIM, OUTPUT_DIM, NUM_GAUSSIANS)

    ref = mdn_reference(x, params, output_dim=OUTPUT_DIM,
                        num_gaussians=NUM_GAUSSIANS)

    fwd = jax.jit(functools.partial(
        mdn_forward, output_dim=OUTPUT_DIM, num_gaussians=NUM_GAUSSIANS,
        batch_block=512))

    out_dim = OUTPUT_DIM * NUM_GAUSSIANS + 2 * NUM_GAUSSIANS

    # f32 weights/activations: tight check against the plain-JAX reference.
    prep_f32 = prepare_params(params, compute_dtype=jnp.float32)
    out_f32 = jax.block_until_ready(fwd(x, prep_f32))
    assert out_f32.shape == (BATCH, out_dim)
    assert jnp.allclose(out_f32, ref, atol=1e-4, rtol=1e-4)

    # bf16 weights + bf16-resident hidden activations (MXU fast path, f32 head
    # epilogue): looser tolerance to absorb bf16 quantization.
    prep_bf16 = prepare_params(params, compute_dtype=jnp.bfloat16)
    out_bf16 = jax.block_until_ready(fwd(x, prep_bf16))
    assert out_bf16.shape == (BATCH, out_dim)
    assert jnp.allclose(out_bf16, ref, atol=5e-2, rtol=5e-2)

    # Larger batch to exercise the multi-step grid (>=2 blocks) and batch
    # padding path (f32, tight check).
    B2 = 384
    x2 = jax.random.normal(kx2, (B2, INPUT_DIM), jnp.float32)
    ref2 = mdn_reference(x2, params, output_dim=OUTPUT_DIM,
                         num_gaussians=NUM_GAUSSIANS)
    out2 = jax.block_until_ready(fwd(x2, prep_f32))
    assert out2.shape == (B2, out_dim)
    assert jnp.allclose(out2, ref2, atol=1e-4, rtol=1e-4)

    print("KERNEL_OK")
</pallas_src>

<mosaic_0001>
module attributes {stable_mosaic.version = 11 : i64} {
  func.func @mdn_kernel(%arg0: i32, %arg1: memref<16x32xf32, #tpu.memory_space<vmem>>, %arg2: memref<32x512xf32, #tpu.memory_space<vmem>>, %arg3: memref<1x512xf32, #tpu.memory_space<vmem>>, %arg4: memref<512x512xf32, #tpu.memory_space<vmem>>, %arg5: memref<1x512xf32, #tpu.memory_space<vmem>>, %arg6: memref<512x512xf32, #tpu.memory_space<vmem>>, %arg7: memref<1x512xf32, #tpu.memory_space<vmem>>, %arg8: memref<512x128xf32, #tpu.memory_space<vmem>>, %arg9: memref<1x128xf32, #tpu.memory_space<vmem>>, %arg10: memref<128x128xf32, #tpu.memory_space<vmem>>, %arg11: memref<1x128xf32, #tpu.memory_space<vmem>>, %arg12: memref<16x128xf32, #tpu.memory_space<vmem>>) attributes {dimension_semantics = [#tpu.dimension_semantics<parallel>], iteration_bounds = array<i64: 1>, scalar_prefetch = 0 : i64, scratch_operands = 0 : i64, tpu.core_type = #tpu.core_type<tc>, window_params = [{transform_indices = @transform_0, window_bounds = array<i64: 16, 32>}, {pipeline_mode = #tpu.pipeline_mode<synchronous>, transform_indices = @transform_1, window_bounds = array<i64: 32, 512>}, {pipeline_mode = #tpu.pipeline_mode<synchronous>, transform_indices = @transform_2, window_bounds = array<i64: 1, 512>}, {pipeline_mode = #tpu.pipeline_mode<synchronous>, transform_indices = @transform_3, window_bounds = array<i64: 512, 512>}, {pipeline_mode = #tpu.pipeline_mode<synchronous>, transform_indices = @transform_4, window_bounds = array<i64: 1, 512>}, {pipeline_mode = #tpu.pipeline_mode<synchronous>, transform_indices = @transform_5, window_bounds = array<i64: 512, 512>}, {pipeline_mode = #tpu.pipeline_mode<synchronous>, transform_indices = @transform_6, window_bounds = array<i64: 1, 512>}, {pipeline_mode = #tpu.pipeline_mode<synchronous>, transform_indices = @transform_7, window_bounds = array<i64: 512, 128>}, {pipeline_mode = #tpu.pipeline_mode<synchronous>, transform_indices = @transform_8, window_bounds = array<i64: 1, 128>}, {pipeline_mode = #tpu.pipeline_mode<synchronous>, transform_indices = @transform_9, window_bounds = array<i64: 128, 128>}, {pipeline_mode = #tpu.pipeline_mode<synchronous>, transform_indices = @transform_10, window_bounds = array<i64: 1, 128>}, {transform_indices = @transform_11, window_bounds = array<i64: 16, 128>}]} {
    %c0 = arith.constant 0 : index
    %c0_0 = arith.constant 0 : index
    %0 = vector.load %arg1[%c0, %c0_0] : memref<16x32xf32, #tpu.memory_space<vmem>>, vector<16x32xf32>
    %c0_1 = arith.constant 0 : index
    %c0_2 = arith.constant 0 : index
    %1 = vector.load %arg2[%c0_1, %c0_2] : memref<32x512xf32, #tpu.memory_space<vmem>>, vector<32x512xf32>
    %cst = arith.constant dense<0.000000e+00> : vector<16x512xf32>
    %2 = tpu.matmul %0, %1, %cst {dimension_numbers = #tpu.dot_dimension_numbers<[1], [0], [0], [1], [0, 0, 1, 1], [], []>} : vector<16x32xf32>, vector<32x512xf32>, vector<16x512xf32> -> vector<16x512xf32>
    %c0_3 = arith.constant 0 : index
    %c0_4 = arith.constant 0 : index
    %3 = vector.load %arg3[%c0_3, %c0_4] : memref<1x512xf32, #tpu.memory_space<vmem>>, vector<1x512xf32>
    %4 = vector.broadcast %3 : vector<1x512xf32> to vector<16x512xf32>
    %5 = arith.addf %2, %4 : vector<16x512xf32>
    %cst_5 = arith.constant 0.000000e+00 : f32
    %6 = vector.broadcast %cst_5 : f32 to vector<16x512xf32>
    %7 = arith.maximumf %5, %6 : vector<16x512xf32>
    %c0_6 = arith.constant 0 : index
    %c0_7 = arith.constant 0 : index
    %8 = vector.load %arg4[%c0_6, %c0_7] : memref<512x512xf32, #tpu.memory_space<vmem>>, vector<512x512xf32>
    %cst_8 = arith.constant dense<0.000000e+00> : vector<16x512xf32>
    %9 = tpu.matmul %7, %8, %cst_8 {dimension_numbers = #tpu.dot_dimension_numbers<[1], [0], [0], [1], [0, 0, 1, 1], [], []>} : vector<16x512xf32>, vector<512x512xf32>, vector<16x512xf32> -> vector<16x512xf32>
    %c0_9 = arith.constant 0 : index
    %c0_10 = arith.constant 0 : index
    %10 = vector.load %arg5[%c0_9, %c0_10] : memref<1x512xf32, #tpu.memory_space<vmem>>, vector<1x512xf32>
    %11 = vector.broadcast %10 : vector<1x512xf32> to vector<16x512xf32>
    %12 = arith.addf %9, %11 : vector<16x512xf32>
    %cst_11 = arith.constant 0.000000e+00 : f32
    %13 = vector.broadcast %cst_11 : f32 to vector<16x512xf32>
    %14 = arith.maximumf %12, %13 : vector<16x512xf32>
    %c0_12 = arith.constant 0 : index
    %c0_13 = arith.constant 0 : index
    %15 = vector.load %arg6[%c0_12, %c0_13] : memref<512x512xf32, #tpu.memory_space<vmem>>, vector<512x512xf32>
    %cst_14 = arith.constant dense<0.000000e+00> : vector<16x512xf32>
    %16 = tpu.matmul %14, %15, %cst_14 {dimension_numbers = #tpu.dot_dimension_numbers<[1], [0], [0], [1], [0, 0, 1, 1], [], []>} : vector<16x512xf32>, vector<512x512xf32>, vector<16x512xf32> -> vector<16x512xf32>
    %c0_15 = arith.constant 0 : index
    %c0_16 = arith.constant 0 : index
    %17 = vector.load %arg7[%c0_15, %c0_16] : memref<1x512xf32, #tpu.memory_space<vmem>>, vector<1x512xf32>
    %18 = vector.broadcast %17 : vector<1x512xf32> to vector<16x512xf32>
    %19 = arith.addf %16, %18 : vector<16x512xf32>
    %cst_17 = arith.constant 0.000000e+00 : f32
    %20 = vector.broadcast %cst_17 : f32 to vector<16x512xf32>
    %21 = arith.maximumf %19, %20 : vector<16x512xf32>
    %c0_18 = arith.constant 0 : index
    %c0_19 = arith.constant 0 : index
    %22 = vector.load %arg8[%c0_18, %c0_19] : memref<512x128xf32, #tpu.memory_space<vmem>>, vector<512x128xf32>
    %cst_20 = arith.constant dense<0.000000e+00> : vector<16x128xf32>
    %23 = tpu.matmul %21, %22, %cst_20 {dimension_numbers = #tpu.dot_dimension_numbers<[1], [0], [0], [1], [0, 0, 1, 1], [], []>} : vector<16x512xf32>, vector<512x128xf32>, vector<16x128xf32> -> vector<16x128xf32>
    %c0_21 = arith.constant 0 : index
    %c0_22 = arith.constant 0 : index
    %24 = vector.load %arg9[%c0_21, %c0_22] : memref<1x128xf32, #tpu.memory_space<vmem>>, vector<1x128xf32>
    %25 = vector.broadcast %24 : vector<1x128xf32> to vector<16x128xf32>
    %26 = arith.addf %23, %25 : vector<16x128xf32>
    %cst_23 = arith.constant 0.000000e+00 : f32
    %27 = vector.broadcast %cst_23 : f32 to vector<16x128xf32>
    %28 = arith.maximumf %26, %27 : vector<16x128xf32>
    %c0_24 = arith.constant 0 : index
    %c0_25 = arith.constant 0 : index
    %29 = vector.load %arg10[%c0_24, %c0_25] : memref<128x128xf32, #tpu.memory_space<vmem>>, vector<128x128xf32>
    %cst_26 = arith.constant dense<0.000000e+00> : vector<16x128xf32>
    %30 = tpu.matmul %28, %29, %cst_26 {dimension_numbers = #tpu.dot_dimension_numbers<[1], [0], [0], [1], [0, 0, 1, 1], [], []>} : vector<16x128xf32>, vector<128x128xf32>, vector<16x128xf32> -> vector<16x128xf32>
    %c0_27 = arith.constant 0 : index
    %c0_28 = arith.constant 0 : index
    %31 = vector.load %arg11[%c0_27, %c0_28] : memref<1x128xf32, #tpu.memory_space<vmem>>, vector<1x128xf32>
    %32 = vector.broadcast %31 : vector<1x128xf32> to vector<16x128xf32>
    %33 = arith.addf %30, %32 : vector<16x128xf32>
    %34 = tpu.iota {dimensions = array<i32: 1>} : vector<16x128xi32>
    %cst_29 = arith.constant 0.000000e+00 : f32
    %35 = vector.broadcast %cst_29 : f32 to vector<16x128xf32>
    %36 = arith.maximumf %33, %35 : vector<16x128xf32>
    %37 = math.absf %33 : vector<16x128xf32>
    %cst_30 = arith.constant 0.000000e+00 : f32
    %38 = vector.broadcast %cst_30 : f32 to vector<16x128xf32>
    %39 = arith.subf %38, %37 : vector<16x128xf32>
    %40 = math.exp %39 : vector<16x128xf32>
    %cst_31 = arith.constant 1.000000e+00 : f32
    %41 = vector.broadcast %cst_31 : f32 to vector<16x128xf32>
    %42 = arith.addf %41, %40 : vector<16x128xf32>
    %43 = math.log %42 : vector<16x128xf32>
    %44 = arith.addf %36, %43 : vector<16x128xf32>
    %cst_32 = arith.constant 9.99999997E-7 : f32
    %45 = vector.broadcast %cst_32 : f32 to vector<16x128xf32>
    %46 = arith.addf %44, %45 : vector<16x128xf32>
    %c20_i32 = arith.constant 20 : i32
    %47 = vector.broadcast %c20_i32 : i32 to vector<16x128xi32>
    %48 = arith.cmpi sge, %34, %47 : vector<16x128xi32>
    %c25_i32 = arith.constant 25 : i32
    %49 = vector.broadcast %c25_i32 : i32 to vector<16x128xi32>
    %50 = arith.cmpi slt, %34, %49 : vector<16x128xi32>
    %51 = arith.andi %48, %50 : vector<16x128xi1>
    %cst_33 = arith.constant -1.000000e+30 : f32
    %52 = vector.broadcast %cst_33 : f32 to vector<16x128xf32>
    %53 = arith.select %51, %33, %52 : vector<16x128xi1>, vector<16x128xf32>
    %cst_34 = arith.constant dense<0xFF800000> : vector<16xf32>
    %54 = vector.multi_reduction <maximumf>, %53, %cst_34 [1] : vector<16x128xf32> to vector<16xf32>
    %55 = vector.shape_cast %54 : vector<16xf32> to vector<16x1xf32>
    %56 = vector.broadcast %55 : vector<16x1xf32> to vector<16x128xf32>
    %57 = arith.subf %53, %56 : vector<16x128xf32>
    %58 = math.exp %57 : vector<16x128xf32>
    %cst_35 = arith.constant dense<0.000000e+00> : vector<16xf32>
    %59 = vector.multi_reduction <add>, %58, %cst_35 [1] : vector<16x128xf32> to vector<16xf32>
    %60 = vector.shape_cast %59 : vector<16xf32> to vector<16x1xf32>
    %cst_36 = arith.constant 1.000000e+00 : f32
    %61 = vector.broadcast %cst_36 : f32 to vector<16x1xf32>
    %62 = arith.divf %61, %60 : vector<16x1xf32>
    %63 = vector.broadcast %62 : vector<16x1xf32> to vector<16x128xf32>
    %64 = arith.mulf %58, %63 : vector<16x128xf32>
    %c15_i32 = arith.constant 15 : i32
    %65 = vector.broadcast %c15_i32 : i32 to vector<16x128xi32>
    %66 = arith.cmpi slt, %34, %65 : vector<16x128xi32>
    %c20_i32_37 = arith.constant 20 : i32
    %67 = vector.broadcast %c20_i32_37 : i32 to vector<16x128xi32>
    %68 = arith.cmpi slt, %34, %67 : vector<16x128xi32>
    %69 = arith.select %68, %46, %64 : vector<16x128xi1>, vector<16x128xf32>
    %70 = arith.select %66, %33, %69 : vector<16x128xi1>, vector<16x128xf32>
    %c0_38 = arith.constant 0 : index
    %c0_39 = arith.constant 0 : index
    %71 = vector.load %arg12[%c0_38, %c0_39] : memref<16x128xf32, #tpu.memory_space<vmem>>, vector<16x128xf32>
    tpu.vector_store %arg12[%c0_38, %c0_39], %70 {strides = array<i32>} : memref<16x128xf32, #tpu.memory_space<vmem>>, vector<16x128xf32>,
    return
  }
  func.func @transform_0(%arg0: i32) -> (i32, i32) {
    %c0_i32 = arith.constant 0 : i32
    %c0_i32_0 = arith.constant 0 : i32
    return %arg0, %c0_i32 : i32, i32
  }
  func.func @transform_1(%arg0: i32) -> (i32, i32) {
    %c0_i32 = arith.constant 0 : i32
    %c0_i32_0 = arith.constant 0 : i32
    %c0_i32_1 = arith.constant 0 : i32
    return %c0_i32, %c0_i32_0 : i32, i32
  }
  func.func @transform_2(%arg0: i32) -> (i32, i32) {
    %c0_i32 = arith.constant 0 : i32
    %c0_i32_0 = arith.constant 0 : i32
    %c0_i32_1 = arith.constant 0 : i32
    return %c0_i32, %c0_i32_0 : i32, i32
  }
  func.func @transform_3(%arg0: i32) -> (i32, i32) {
    %c0_i32 = arith.constant 0 : i32
    %c0_i32_0 = arith.constant 0 : i32
    %c0_i32_1 = arith.constant 0 : i32
    return %c0_i32, %c0_i32_0 : i32, i32
  }
  func.func @transform_4(%arg0: i32) -> (i32, i32) {
    %c0_i32 = arith.constant 0 : i32
    %c0_i32_0 = arith.constant 0 : i32
    %c0_i32_1 = arith.constant 0 : i32
    return %c0_i32, %c0_i32_0 : i32, i32
  }
  func.func @transform_5(%arg0: i32) -> (i32, i32) {
    %c0_i32 = arith.constant 0 : i32
    %c0_i32_0 = arith.constant 0 : i32
    %c0_i32_1 = arith.constant 0 : i32
    return %c0_i32, %c0_i32_0 : i32, i32
  }
  func.func @transform_6(%arg0: i32) -> (i32, i32) {
    %c0_i32 = arith.constant 0 : i32
    %c0_i32_0 = arith.constant 0 : i32
    %c0_i32_1 = arith.constant 0 : i32
    return %c0_i32, %c0_i32_0 : i32, i32
  }
  func.func @transform_7(%arg0: i32) -> (i32, i32) {
    %c0_i32 = arith.constant 0 : i32
    %c0_i32_0 = arith.constant 0 : i32
    %c0_i32_1 = arith.constant 0 : i32
    return %c0_i32, %c0_i32_0 : i32, i32
  }
  func.func @transform_8(%arg0: i32) -> (i32, i32) {
    %c0_i32 = arith.constant 0 : i32
    %c0_i32_0 = arith.constant 0 : i32
    %c0_i32_1 = arith.constant 0 : i32
    return %c0_i32, %c0_i32_0 : i32, i32
  }
  func.func @transform_9(%arg0: i32) -> (i32, i32) {
    %c0_i32 = arith.constant 0 : i32
    %c0_i32_0 = arith.constant 0 : i32
    %c0_i32_1 = arith.constant 0 : i32
    return %c0_i32, %c0_i32_0 : i32, i32
  }
  func.func @transform_10(%arg0: i32) -> (i32, i32) {
    %c0_i32 = arith.constant 0 : i32
    %c0_i32_0 = arith.constant 0 : i32
    %c0_i32_1 = arith.constant 0 : i32
    return %c0_i32, %c0_i32_0 : i32, i32
  }
  func.func @transform_11(%arg0: i32) -> (i32, i32) {
    %c0_i32 = arith.constant 0 : i32
    %c0_i32_0 = arith.constant 0 : i32
    return %arg0, %c0_i32 : i32, i32
  }
}

</mosaic_0001>

<bundles_post_ra>
// kernel: mdn_forward.1
= control target key start
LH: loop header
LB: loop body
LE: loop exit
PB: predicated region body
PF: predicated region fallthrough
CT: control target
= control target key end

     0   :  { %16 = vsyncpa [#allocation3], 0  ;;  %s2511_s0 = inlined_call_operand.hbm [shape: f32[16,32], index: 0, kind: input, shape index: {}]   ;;  %s2512_s1 = inlined_call_operand.hbm [shape: f32[32,512], index: 1, kind: input, shape index: {}]   ;;  %s2513_s2 = inlined_call_operand.hbm [shape: f32[1,512], index: 2, kind: input, shape index: {}]   ;;  %s2514_s3 = inlined_call_operand.hbm [shape: f32[512,512], index: 3, kind: input, shape index: {}]   ;;  %s2515_s4 = inlined_call_operand.vmem [shape: f32[1,512], index: 4, kind: input, shape index: {}]   ;;  %s2516_s5 = inlined_call_operand.hbm [shape: f32[512,512], index: 5, kind: input, shape index: {}]   ;;  %s2517_s6 = inlined_call_operand.vmem [shape: f32[1,512], index: 6, kind: input, shape index: {}]   ;;  %s2518_s7 = inlined_call_operand.hbm [shape: f32[512,128], index: 7, kind: input, shape index: {}]   ;;  %s2519_s8 = inlined_call_operand.vmem [shape: f32[1,128], index: 8, kind: input, shape index: {}]   ;;  %s2520_s9 = inlined_call_operand.hbm [shape: f32[128,128], index: 9, kind: input, shape index: {}]   ;;  %s2521_s10 = inlined_call_operand.vmem [shape: f32[1,128], index: 10, kind: input, shape index: {}]   ;;  %s2522_s11 = inlined_call_operand.hbm [shape: f32[16,128], index: 11, kind: output, shape index: {}]  }
   0x1   :  { %17 = vsyncpa [#allocation6], 0 }
   0x2   :  { %18 = vsyncpa [#allocation9], 0 }
   0x3   :  { %19 = vsyncpa [#allocation12], 0 }
   0x4   :  { %20 = vsyncpa [#allocation4], 0  ;;  %s2259_s17 = smov [#allocation5]  }
   0x5   :  { %s38_s18 = sshll.u32 %s2259_s17, 4  ;;  %s39_s18 = int_to_ptr.vmem [resolvable:$true] %s38_s18 }
   0x6   :  { %s2097_s19 = scalar_lea.vmem %s39_s18, 2048  ;;  %p2102_p1 = scmp.lt.s32.totalorder %s39_s18, %s39_s18 }
   0x7   :  { %p2098_p0 = scmp.ne.s32.totalorder %s39_s18, %s2097_s19  ;;  %p2103_p2 = scmp.lt.s32.totalorder %s2097_s19, %s2097_s19 }
   0x9   :  { %p2104_p3 = por %p2103_p2, %p2102_p1 }
   0xb   :  { %p2105_p4 = pnand %p2104_p3, %p2098_p0 }
   0xd   :  { %2108 = shalt.err (!%p2105_p4)
}
   0xe   :  { %s2260_s20 = smov 512   ;;  %s2261_s21 = smov 32  }
   0xf   :  { %44 = dma.hbm_to_vmem [thread:$0]  %s2512_s1, 2048, %s39_s18, [#allocation6], %s2260_s20, %s2260_s20, %s2261_s21  }
  0x10   :  { %s2262_s24 = smov [#allocation8]  }
  0x11   :  { %s60_s25 = sshll.u32 %s2262_s24, 4  ;;  %s61_s25 = int_to_ptr.vmem [resolvable:$true] %s60_s25 }
  0x12   :  { %s2117_s26 = scalar_lea.vmem %s61_s25, 32768  ;;  %p2122_p6 = scmp.lt.s32.totalorder %s61_s25, %s61_s25 }
  0x13   :  { %p2118_p5 = scmp.ne.s32.totalorder %s61_s25, %s2117_s26  ;;  %p2123_p7 = scmp.lt.s32.totalorder %s2117_s26, %s2117_s26 }
  0x15   :  { %p2124_p8 = por %p2123_p7, %p2122_p6 }
  0x17   :  { %p2125_p9 = pnand %p2124_p8, %p2118_p5 }
  0x19   :  { %2128 = shalt.err (!%p2125_p9)
}
  0x1a   :  { %66 = dma.hbm_to_vmem [thread:$0]  %s2514_s3, 32768, %s61_s25, [#allocation9], %s2260_s20, %s2260_s20, %s2261_s21  }
  0x1b   :  { %s2263_s29 = smov [#allocation11]   ;;  %s2264_s1 = smov [#allocation2]  }
  0x1c   :  { %s88_s30 = sshll.u32 %s2263_s29, 4  ;;  %s26_s12 = sshll.u32 %s2264_s1, 4  ;;  %s89_s30 = int_to_ptr.vmem [resolvable:$true] %s88_s30  ;;  %s27_s12 = int_to_ptr.vmem [resolvable:$true] %s26_s12 }
  0x1d   :  { %s2137_s13 = scalar_lea.vmem %s89_s30, 8192  ;;  %p2142_p11 = scmp.lt.s32.totalorder %s89_s30, %s89_s30 }
  0x1e   :  { %p2138_p10 = scmp.ne.s32.totalorder %s89_s30, %s2137_s13  ;;  %p2143_p12 = scmp.lt.s32.totalorder %s2137_s13, %s2137_s13 }
  0x20   :  { %p2144_p13 = por %p2143_p12, %p2142_p11 }
  0x22   :  { %p2145_p0 = pnand %p2144_p13, %p2138_p10 }
  0x24   :  { %2148 = shalt.err (!%p2145_p0)
}
  0x25   :  { %s2265_s14 = smov 128   ;;  %s2266_s15 = smov 8  }
  0x26   :  { %94 = dma.hbm_to_vmem [thread:$0]  %s2518_s7, 8192, %s89_s30, [#allocation12], %s2265_s14, %s2265_s14, %s2266_s15  }
  0x27   :  { %s2157_s17 = scalar_lea.vmem %s27_s12, 256  ;;  %p2162_p2 = scmp.lt.s32.totalorder %s27_s12, %s27_s12 }
  0x28   :  { %p2158_p1 = scmp.ne.s32.totalorder %s27_s12, %s2157_s17  ;;  %p2163_p3 = scmp.lt.s32.totalorder %s2157_s17, %s2157_s17 }
  0x2a   :  { %p2164_p4 = por %p2163_p3, %p2162_p2 }
  0x2c   :  { %p2165_p5 = pnand %p2164_p4, %p2158_p1 }
  0x2e   :  { %2168 = shalt.err (!%p2165_p5)
}
  0x2f   :  { %32 = dma.hbm_to_vmem [thread:$0]  %s2511_s0, 256, %s27_s12, [#allocation3], %s2265_s14, %s2265_s14, %s2266_s15  }
  0x30   :  { %s2267_s22 = smov [#allocation7]   ;;  %s2268_s24 = smov [#allocation10]  }
  0x31   :  { %s51_s23 = sshll.u32 %s2267_s22, 4  ;;  %s74_s25 = sshll.u32 %s2268_s24, 4  ;;  %s52_s23 = int_to_ptr.vmem [resolvable:$true] %s51_s23  ;;  %s75_s25 = int_to_ptr.vmem [resolvable:$true] %s74_s25 }
  0x32   :  { %s2177_s7 = scalar_lea.vmem %s52_s23, 64  ;;  %p2182_p7 = scmp.lt.s32.totalorder %s52_s23, %s52_s23 }
  0x33   :  { %p2178_p6 = scmp.ne.s32.totalorder %s52_s23, %s2177_s7  ;;  %p2183_p8 = scmp.lt.s32.totalorder %s2177_s7, %s2177_s7 }
  0x35   :  { %p2184_p9 = por %p2183_p8, %p2182_p7 }
  0x37   :  { %p2185_p10 = pnand %p2184_p9, %p2178_p6 }
  0x39   :  { %2188 = shalt.err (!%p2185_p10)
}
  0x3a   :  { %54 = dma.hbm_to_vmem [thread:$0]  %s2513_s2, 64, %s52_s23, [#allocation6]  }
  0x3b   :  { %s2197_s28 = scalar_lea.vmem %s75_s25, 32768  ;;  %p2202_p12 = scmp.lt.s32.totalorder %s75_s25, %s75_s25 }
  0x3c   :  { %p2198_p11 = scmp.ne.s32.totalorder %s75_s25, %s2197_s28  ;;  %p2203_p13 = scmp.lt.s32.totalorder %s2197_s28, %s2197_s28 }
  0x3e   :  { %p2204_p0 = por %p2203_p13, %p2202_p12 }
  0x40   :  { %p2205_p1 = pnand %p2204_p0, %p2198_p11 }
  0x42   :  { %2208 = shalt.err (!%p2205_p1)
}
  0x43   :  { %80 = dma.hbm_to_vmem [thread:$0]  %s2516_s5, 32768, %s75_s25, [#allocation9], %s2260_s20, %s2260_s20, %s2261_s21  }
  0x44   :  { %s2269_s30 = smov [#allocation13]  }
  0x45   :  { %s102_s1 = sshll.u32 %s2269_s30, 4  ;;  %s103_s1 = int_to_ptr.vmem [resolvable:$true] %s102_s1 }
  0x46   :  { %s2217_s12 = scalar_lea.vmem %s103_s1, 2048  ;;  %p2222_p3 = scmp.lt.s32.totalorder %s103_s1, %s103_s1 }
  0x47   :  { %p2218_p2 = scmp.ne.s32.totalorder %s103_s1, %s2217_s12  ;;  %p2223_p4 = scmp.lt.s32.totalorder %s2217_s12, %s2217_s12 }
  0x49   :  { %p2224_p5 = por %p2223_p4, %p2222_p3 }
  0x4b   :  { %p2225_p6 = pnand %p2224_p5, %p2218_p2 }
  0x4d   :  { %2228 = shalt.err (!%p2225_p6)
}
  0x4e   :  { %108 = dma.hbm_to_vmem [thread:$0]  %s2520_s9, 2048, %s103_s1, [#allocation12], %s2265_s14, %s2265_s14, %s2266_s15  }
  0x4f   :  { %2249 = dma.done.wait [#allocation3], 256  }
  0x50   :  { %2250 = vsyncadd [#allocation3], 4294967040 }
  0x51   :  { %2251 = dma.done.wait [#allocation6], 2112  }
  0x52   :  { %2252 = vsyncadd [#allocation6], 4294965184 }
  0x53   :  { %2253 = dma.done.wait [#allocation9], 65536  }
  0x54   :  { %2254 = vsyncadd [#allocation9], 4294901760 }
  0x55   :  { %2255 = dma.done.wait [#allocation12], 10240  }
  0x56   :  { %2256 = vsyncadd [#allocation12], 4294957056  ;;  %v2270_v0 = vmov 0.0   ;;  %v147_v1 = vld [vmem:[#allocation5 + $0x68] sm:$0xff]  ;;  %v146_v2 = vld [vmem:[#allocation5 + $0x60] sm:$0xff]  ;;  %vm172_vm0 = vcmask 261120  }
  0x57   :  { %243 = vmatprep.mubr.f32.mxu1 %v2270_v0  ;;  %v143_v3 = vld [vmem:[#allocation5 + $0x48] sm:$0xff]  ;;  %203 = vmatprep.subr.mxu1 %v147_v1  ;;  %v142_v4 = vld [vmem:[#allocation5 + $0x40] sm:$0xff]  ;;  %v132_v9 = vld [vmem:[#allocation2] sm:$0xff] }
  0x58   :  { %204 = vmatpush1.msra.mxu1 %v146_v2  ;;  %v139_v5 = vld [vmem:[#allocation5 + $0x28] sm:$0xff]  ;;  %v138_v6 = vld [vmem:[#allocation5 + $0x20] sm:$0xff]  ;;  %v149_v10 = vld [vmem:[#allocation5 + $0x78] sm:$0xff] }
  0x59   :  { %205 = vmatprep.subr.mxu1 %v143_v3  ;;  %v135_v7 = vld [vmem:[#allocation5 + $0x8] sm:$0xff]  ;;  %v134_v8 = vld [vmem:[#allocation5] sm:$0xff]  ;;  %v148_v13 = vld [vmem:[#allocation5 + $0x70] sm:$0xff] }
  0x5a   :  { %206 = vmatpush1.msra.mxu1 %v142_v4  ;;  %v402_v11 = vld [vmem:[#allocation8 + $0x1e8] sm:$0xff]  ;;  %v401_v12 = vld [vmem:[#allocation8 + $0x1e0] sm:$0xff]  ;;  %v145_v14 = vld [vmem:[#allocation5 + $0x58] sm:$0xff] }
  0x5b   :  { %207 = vmatprep.subr.mxu1 %v139_v5  ;;  %619 = vmatprep.subr.mxu0 %v402_v11  ;;  %v398_v15 = vld [vmem:[#allocation8 + $0x1c8] sm:$0xff]  ;;  %v397_v17 = vld [vmem:[#allocation8 + $0x1c0] sm:$0xff]  ;;  %v133_v18 = vld [vmem:[#allocation2 + $0x8] sm:$0xff] }
  0x5c   :  { %208 = vmatpush1.msra.mxu1 %v138_v6  ;;  %620 = vmatpush1.msra.mxu0 %v401_v12  ;;  %v144_v16 = vld [vmem:[#allocation5 + $0x50] sm:$0xff]  ;;  %v141_v19 = vld [vmem:[#allocation5 + $0x38] sm:$0xff]  ;;  %v393_v24 = vld [vmem:[#allocation8 + $0x1a0] sm:$0xff] }
  0x5d   :  { %209 = vmatprep.subr.mxu1 %v135_v7  ;;  %v140_v20 = vld [vmem:[#allocation5 + $0x30] sm:$0xff]  ;;  %621 = vmatprep.subr.mxu0 %v398_v15  ;;  %v137_v21 = vld [vmem:[#allocation5 + $0x18] sm:$0xff]  ;;  %v389_v26 = vld [vmem:[#allocation8 + $0x180] sm:$0xff] }
  0x5e   :  { %210 = vmatpush1.msra.mxu1 %v134_v8  ;;  %622 = vmatpush1.msra.mxu0 %v397_v17  ;;  %v394_v22 = vld [vmem:[#allocation8 + $0x1a8] sm:$0xff]  ;;  %v385_v29 = vld [vmem:[#allocation8 + $0x160] sm:$0xff] }
  0x5f   :  { %1925 = vmatmul.mubr.msk.f32.vlgmr.msra.gmra.mxu1 %vm172_vm0, %v132_v9  ;;  %280 = vmatprep.subr.mxu1 %v149_v10  ;;  %v136_v23 = vld [vmem:[#allocation5 + $0x10] sm:$0xff]  ;;  %v529_v30 = vld [vmem:[#allocation8 + $0x5e0] sm:$0xff] }
  0x60   :  { %281 = vmatpush1.msra.mxu1 %v148_v13  ;;  %249 = vmatprep.mubr.f32.mxu1 %v2270_v0  ;;  %v390_v25 = vld [vmem:[#allocation8 + $0x188] sm:$0xff]  ;;  %v381_v33 = vld [vmem:[#allocation8 + $0x140] sm:$0xff] }
  0x61   :  { %282 = vmatprep.subr.mxu1 %v145_v14  ;;  %623 = vmatprep.subr.mxu0 %v394_v22  ;;  %v386_v27 = vld [vmem:[#allocation8 + $0x168] sm:$0xff]  ;;  %v525_v34 = vld [vmem:[#allocation8 + $0x5c0] sm:$0xff] }
  0x62   :  { %283 = vmatpush1.msra.mxu1 %v144_v16  ;;  %624 = vmatpush1.msra.mxu0 %v393_v24  ;;  %v530_v28 = vld [vmem:[#allocation8 + $0x5e8] sm:$0xff]  ;;  %v377_v37 = vld [vmem:[#allocation8 + $0x120] sm:$0xff] }
  0x63   :  { %1926 = vmatmul.mubr.msk.f32.gmra.mxu1 %vm172_vm0, %v133_v18  ;;  %284 = vmatprep.subr.mxu1 %v141_v19  ;;  %v382_v31 = vld [vmem:[#allocation8 + $0x148] sm:$0xff]  ;;  %v521_v38 = vld [vmem:[#allocation8 + $0x5a0] sm:$0xff] }
  0x64   :  { %285 = vmatpush1.msra.mxu1 %v140_v20  ;;  %320 = vmatprep.mubr.f32.mxu1 %v2270_v0  ;;  %v526_v32 = vld [vmem:[#allocation8 + $0x5c8] sm:$0xff]  ;;  %v373_v41 = vld [vmem:[#allocation8 + $0x100] sm:$0xff] }
  0x65   :  { %286 = vmatprep.subr.mxu1 %v137_v21  ;;  %625 = vmatprep.subr.mxu0 %v390_v25  ;;  %v378_v35 = vld [vmem:[#allocation8 + $0x128] sm:$0xff]  ;;  %v517_v42 = vld [vmem:[#allocation8 + $0x580] sm:$0xff] }
  0x66   :  { %287 = vmatpush1.msra.mxu1 %v136_v23  ;;  %626 = vmatpush1.msra.mxu0 %v389_v26  ;;  %v522_v36 = vld [vmem:[#allocation8 + $0x5a8] sm:$0xff]  ;;  %v369_v45 = vld [vmem:[#allocation8 + $0xe0] sm:$0xff] }
  0x67   :  { %1927 = vmatmul.mubr.msk.f32.vlgmr.msra.gmra.mxu1 %vm172_vm0, %v132_v9  ;;  %627 = vmatprep.subr.mxu0 %v386_v27  ;;  %v374_v39 = vld [vmem:[#allocation8 + $0x108] sm:$0xff]  ;;  %v513_v46 = vld [vmem:[#allocation8 + $0x560] sm:$0xff] }
  0x68   :  { %326 = vmatprep.mubr.f32.mxu1 %v2270_v0  ;;  %696 = vmatprep.subr.mxu1 %v530_v28  ;;  %v518_v40 = vld [vmem:[#allocation8 + $0x588] sm:$0xff]  ;;  %v365_v49 = vld [vmem:[#allocation8 + $0xc0] sm:$0xff] }
  0x69   :  { %628 = vmatpush1.msra.mxu0 %v385_v29  ;;  %697 = vmatpush1.msra.mxu1 %v529_v30  ;;  %v370_v43 = vld [vmem:[#allocation8 + $0xe8] sm:$0xff]  ;;  %v509_v50 = vld [vmem:[#allocation8 + $0x540] sm:$0xff] }
  0x6a   :  { %629 = vmatprep.subr.mxu0 %v382_v31  ;;  %698 = vmatprep.subr.mxu1 %v526_v32  ;;  %v514_v44 = vld [vmem:[#allocation8 + $0x568] sm:$0xff]  ;;  %v361_v53 = vld [vmem:[#allocation8 + $0xa0] sm:$0xff] }
  0x6b   :  { %1928 = vmatmul.mubr.msk.f32.gmra.mxu1 %vm172_vm0, %v133_v18  ;;  %630 = vmatpush1.msra.mxu0 %v381_v33  ;;  %v366_v47 = vld [vmem:[#allocation8 + $0xc8] sm:$0xff]  ;;  %v505_v54 = vld [vmem:[#allocation8 + $0x520] sm:$0xff] }
  0x6c   :  { %699 = vmatpush1.msra.mxu1 %v525_v34  ;;  %631 = vmatprep.subr.mxu0 %v378_v35  ;;  %v510_v48 = vld [vmem:[#allocation8 + $0x548] sm:$0xff]  ;;  %v357_v57 = vld [vmem:[#allocation8 + $0x80] sm:$0xff] }
  0x6d   :  { %700 = vmatprep.subr.mxu1 %v522_v36  ;;  %632 = vmatpush1.msra.mxu0 %v377_v37  ;;  %v362_v51 = vld [vmem:[#allocation8 + $0xa8] sm:$0xff]  ;;  %v501_v58 = vld [vmem:[#allocation8 + $0x500] sm:$0xff] }
  0x6e   :  { %701 = vmatpush1.msra.mxu1 %v521_v38  ;;  %633 = vmatprep.subr.mxu0 %v374_v39  ;;  %v506_v52 = vld [vmem:[#allocation8 + $0x528] sm:$0xff]  ;;  %v353_v61 = vld [vmem:[#allocation8 + $0x60] sm:$0xff] }
  0x6f   :  { %702 = vmatprep.subr.mxu1 %v518_v40  ;;  %634 = vmatpush1.msra.mxu0 %v373_v41  ;;  %v358_v55 = vld [vmem:[#allocation8 + $0x88] sm:$0xff]  ;;  %v497_v62 = vld [vmem:[#allocation8 + $0x4e0] sm:$0xff] }
  0x70   :  { %703 = vmatpush1.msra.mxu1 %v517_v42  ;;  %635 = vmatprep.subr.mxu0 %v370_v43  ;;  %v502_v56 = vld [vmem:[#allocation8 + $0x508] sm:$0xff]  ;;  %v349_v1 = vld [vmem:[#allocation8 + $0x40] sm:$0xff] }
  0x71   :  { %704 = vmatprep.subr.mxu1 %v514_v44  ;;  %636 = vmatpush1.msra.mxu0 %v369_v45  ;;  %v354_v59 = vld [vmem:[#allocation8 + $0x68] sm:$0xff]  ;;  %v493_v2 = vld [vmem:[#allocation8 + $0x4c0] sm:$0xff] }
  0x72   :  { %705 = vmatpush1.msra.mxu1 %v513_v46  ;;  %637 = vmatprep.subr.mxu0 %v366_v47  ;;  %v498_v60 = vld [vmem:[#allocation8 + $0x4e8] sm:$0xff]  ;;  %v345_v5 = vld [vmem:[#allocation8 + $0x20] sm:$0xff] }
  0x73   :  { %706 = vmatprep.subr.mxu1 %v510_v48  ;;  %638 = vmatpush1.msra.mxu0 %v365_v49  ;;  %v350_v63 = vld [vmem:[#allocation8 + $0x48] sm:$0xff]  ;;  %v489_v6 = vld [vmem:[#allocation8 + $0x4a0] sm:$0xff] }
  0x74   :  { %707 = vmatpush1.msra.mxu1 %v509_v50  ;;  %639 = vmatprep.subr.mxu0 %v362_v51  ;;  %v494_v0 = vld [vmem:[#allocation8 + $0x4c8] sm:$0xff]  ;;  %v341_v9 = vld [vmem:[#allocation8] sm:$0xff] }
  0x75   :  { %708 = vmatprep.subr.mxu1 %v506_v52  ;;  %640 = vmatpush1.msra.mxu0 %v361_v53  ;;  %v346_v3 = vld [vmem:[#allocation8 + $0x28] sm:$0xff]  ;;  %v485_v10 = vld [vmem:[#allocation8 + $0x480] sm:$0xff] }
  0x76   :  { %709 = vmatpush1.msra.mxu1 %v505_v54  ;;  %641 = vmatprep.subr.mxu0 %v358_v55  ;;  %v490_v4 = vld [vmem:[#allocation8 + $0x4a8] sm:$0xff]  ;;  %v465_v13 = vld [vmem:[#allocation8 + $0x3e0] sm:$0xff] }
  0x77   :  { %710 = vmatprep.subr.mxu1 %v502_v56  ;;  %642 = vmatpush1.msra.mxu0 %v357_v57  ;;  %v342_v7 = vld [vmem:[#allocation8 + $0x8] sm:$0xff]  ;;  %v481_v14 = vld [vmem:[#allocation8 + $0x460] sm:$0xff] }
  0x78   :  { %711 = vmatpush1.msra.mxu1 %v501_v58  ;;  %643 = vmatprep.subr.mxu0 %v354_v59  ;;  %v486_v8 = vld [vmem:[#allocation8 + $0x488] sm:$0xff]  ;;  %v461_v17 = vld [vmem:[#allocation8 + $0x3c0] sm:$0xff] }
  0x79   :  { %712 = vmatprep.subr.mxu1 %v498_v60  ;;  %644 = vmatpush1.msra.mxu0 %v353_v61  ;;  %v466_v11 = vld [vmem:[#allocation8 + $0x3e8] sm:$0xff]  ;;  %v477_v18 = vld [vmem:[#allocation8 + $0x440] sm:$0xff] }
  0x7a   :  { %713 = vmatpush1.msra.mxu1 %v497_v62  ;;  %645 = vmatprep.subr.mxu0 %v350_v63  ;;  %v482_v12 = vld [vmem:[#allocation8 + $0x468] sm:$0xff]  ;;  %v457_v21 = vld [vmem:[#allocation8 + $0x3a0] sm:$0xff] }
  0x7b   :  { %714 = vmatprep.subr.mxu1 %v494_v0  ;;  %646 = vmatpush1.msra.mxu0 %v349_v1  ;;  %v462_v15 = vld [vmem:[#allocation8 + $0x3c8] sm:$0xff]  ;;  %v473_v22 = vld [vmem:[#allocation8 + $0x420] sm:$0xff] }
  0x7c   :  { %715 = vmatpush1.msra.mxu1 %v493_v2  ;;  %647 = vmatprep.subr.mxu0 %v346_v3  ;;  %v478_v16 = vld [vmem:[#allocation8 + $0x448] sm:$0xff]  ;;  %v453_v25 = vld [vmem:[#allocation8 + $0x380] sm:$0xff] }
  0x7d   :  { %716 = vmatprep.subr.mxu1 %v490_v4  ;;  %648 = vmatpush1.msra.mxu0 %v345_v5  ;;  %v458_v19 = vld [vmem:[#allocation8 + $0x3a8] sm:$0xff]  ;;  %v469_v26 = vld [vmem:[#allocation8 + $0x400] sm:$0xff] }
  0x7e   :  { %717 = vmatpush1.msra.mxu1 %v489_v6  ;;  %649 = vmatprep.subr.mxu0 %v342_v7  ;;  %v474_v20 = vld [vmem:[#allocation8 + $0x428] sm:$0xff]  ;;  %v449_v29 = vld [vmem:[#allocation8 + $0x360] sm:$0xff] }
  0x7f   :  { %718 = vmatprep.subr.mxu1 %v486_v8  ;;  %650 = vmatpush1.msra.mxu0 %v341_v9  ;;  %v454_v23 = vld [vmem:[#allocation8 + $0x388] sm:$0xff]  ;;  %v593_v30 = vld [vmem:[#allocation8 + $0x7e0] sm:$0xff] }
  0x80   :  { %719 = vmatpush1.msra.mxu1 %v485_v10  ;;  %651 = vmatprep.subr.mxu0 %v466_v11  ;;  %v470_v24 = vld [vmem:[#allocation8 + $0x408] sm:$0xff]  ;;  %v445_v33 = vld [vmem:[#allocation8 + $0x340] sm:$0xff] }
  0x81   :  { %720 = vmatprep.subr.mxu1 %v482_v12  ;;  %652 = vmatpush2.msra.mxu0 %v465_v13  ;;  %v450_v27 = vld [vmem:[#allocation8 + $0x368] sm:$0xff]  ;;  %v589_v34 = vld [vmem:[#allocation8 + $0x7c0] sm:$0xff]  ;;  %v404_v12 = vld [vmem:[#allocation8 + $0x1f8] sm:$0xff] }
  0x82   :  { %721 = vmatpush1.msra.mxu1 %v481_v14  ;;  %653 = vmatprep.subr.mxu0 %v462_v15  ;;  %v594_v28 = vld [vmem:[#allocation8 + $0x7e8] sm:$0xff]  ;;  %v441_v37 = vld [vmem:[#allocation8 + $0x320] sm:$0xff] }
  0x83   :  { %722 = vmatprep.subr.mxu1 %v478_v16  ;;  %654 = vmatpush2.msra.mxu0 %v461_v17  ;;  %v446_v31 = vld [vmem:[#allocation8 + $0x348] sm:$0xff]  ;;  %v585_v38 = vld [vmem:[#allocation8 + $0x7a0] sm:$0xff] }
  0x84   :  { %723 = vmatpush1.msra.mxu1 %v477_v18  ;;  %655 = vmatprep.subr.mxu0 %v458_v19  ;;  %v590_v32 = vld [vmem:[#allocation8 + $0x7c8] sm:$0xff]  ;;  %v437_v41 = vld [vmem:[#allocation8 + $0x300] sm:$0xff] }
  0x85   :  { %724 = vmatprep.subr.mxu1 %v474_v20  ;;  %656 = vmatpush2.msra.mxu0 %v457_v21  ;;  %v442_v35 = vld [vmem:[#allocation8 + $0x328] sm:$0xff]  ;;  %v581_v42 = vld [vmem:[#allocation8 + $0x780] sm:$0xff]  ;;  %v532_v20 = vld [vmem:[#allocation8 + $0x5f8] sm:$0xff]  ;;  %v152_v21 = vlaneseq }
  0x86   :  { %725 = vmatpush1.msra.mxu1 %v473_v22  ;;  %657 = vmatprep.subr.mxu0 %v454_v23  ;;  %v586_v36 = vld [vmem:[#allocation8 + $0x7a8] sm:$0xff]  ;;  %v433_v45 = vld [vmem:[#allocation8 + $0x2e0] sm:$0xff] }
  0x87   :  { %726 = vmatprep.subr.mxu1 %v470_v24  ;;  %658 = vmatpush2.msra.mxu0 %v453_v25  ;;  %v438_v39 = vld [vmem:[#allocation8 + $0x308] sm:$0xff]  ;;  %v577_v46 = vld [vmem:[#allocation8 + $0x760] sm:$0xff]  ;;  %v153_v22 = vshrl.u32 %v152_v21, 7  ;;  %v150_v24 = vld [vmem:[#allocation7] sm:$0xf] }
  0x88   :  { %727 = vmatpush1.msra.mxu1 %v469_v26  ;;  %659 = vmatprep.subr.mxu0 %v450_v27  ;;  %v582_v40 = vld [vmem:[#allocation8 + $0x788] sm:$0xff]  ;;  %v429_v49 = vld [vmem:[#allocation8 + $0x2c0] sm:$0xff] }
  0x89   :  { %728 = vmatprep.subr.mxu1 %v594_v28  ;;  %660 = vmatpush2.msra.mxu0 %v449_v29  ;;  %v434_v43 = vld [vmem:[#allocation8 + $0x2e8] sm:$0xff]  ;;  %v573_v50 = vld [vmem:[#allocation8 + $0x740] sm:$0xff]  ;;  %v2376_v23 = vsub.s32 0, %v153_v22  ;;  %v2378_v25 = vsub.s32 1, %v153_v22 }
  0x8a   :  { %729 = vmatpush2.msra.mxu1 %v593_v30  ;;  %661 = vmatprep.subr.mxu0 %v446_v31  ;;  %v578_v44 = vld [vmem:[#allocation8 + $0x768] sm:$0xff]  ;;  %v425_v53 = vld [vmem:[#allocation8 + $0x2a0] sm:$0xff]  ;;  %v2384_v31 = vsub.s32 2, %v153_v22 }
  0x8b   :  { %730 = vmatprep.subr.mxu1 %v590_v32  ;;  %662 = vmatpush2.msra.mxu0 %v445_v33  ;;  %v430_v47 = vld [vmem:[#allocation8 + $0x2c8] sm:$0xff]  ;;  %v569_v54 = vld [vmem:[#allocation8 + $0x720] sm:$0xff]  ;;  %v155_v26 = vrot.slane %v150_v24, %v2376_v23  ;;  %v159_v27 = vrot.slane %v150_v24, %v2378_v25  ;;  %v2386_v33 = vsub.s32 3, %v153_v22  ;;  %v511_v22 = vld [vmem:[#allocation8 + $0x550] sm:$0xff] }
  0x8c   :  { %731 = vmatpush2.msra.mxu1 %v589_v34  ;;  %663 = vmatprep.subr.mxu0 %v442_v35  ;;  %v574_v48 = vld [vmem:[#allocation8 + $0x748] sm:$0xff]  ;;  %v421_v57 = vld [vmem:[#allocation8 + $0x280] sm:$0xff] }
  0x8d   :  { %732 = vmatprep.subr.mxu1 %v586_v36  ;;  %664 = vmatpush2.msra.mxu0 %v441_v37  ;;  %v426_v51 = vld [vmem:[#allocation8 + $0x2a8] sm:$0xff]  ;;  %v565_v58 = vld [vmem:[#allocation8 + $0x700] sm:$0xff] }
  0x8e   :  { %733 = vmatpush2.msra.mxu1 %v585_v38  ;;  %665 = vmatprep.subr.mxu0 %v438_v39  ;;  %v570_v52 = vld [vmem:[#allocation8 + $0x728] sm:$0xff]  ;;  %v417_v61 = vld [vmem:[#allocation8 + $0x260] sm:$0xff]  ;;  %v163_v39 = vrot.slane %v150_v24, %v2384_v31 }
  0x8f   :  { %734 = vmatprep.subr.mxu1 %v582_v40  ;;  %666 = vmatpush2.msra.mxu0 %v437_v41  ;;  %v422_v55 = vld [vmem:[#allocation8 + $0x288] sm:$0xff]  ;;  %v561_v62 = vld [vmem:[#allocation8 + $0x6e0] sm:$0xff]  ;;  %v403_v40 = vld [vmem:[#allocation8 + $0x1f0] sm:$0xff] }
  0x90   :  { %735 = vmatpush2.msra.mxu1 %v581_v42  ;;  %667 = vmatprep.subr.mxu0 %v434_v43  ;;  %v566_v56 = vld [vmem:[#allocation8 + $0x708] sm:$0xff]  ;;  %v413_v1 = vld [vmem:[#allocation8 + $0x240] sm:$0xff]  ;;  %v400_v42 = vld [vmem:[#allocation8 + $0x1d8] sm:$0xff]  ;;  %v167_v43 = vrot.slane %v150_v24, %v2386_v33 }
  0x91   :  { %736 = vmatprep.subr.mxu1 %v578_v44  ;;  %668 = vmatpush2.msra.mxu0 %v433_v45  ;;  %v418_v59 = vld [vmem:[#allocation8 + $0x268] sm:$0xff]  ;;  %v557_v2 = vld [vmem:[#allocation8 + $0x6c0] sm:$0xff]  ;;  %v399_v45 = vld [vmem:[#allocation8 + $0x1d0] sm:$0xff] }
  0x92   :  { %737 = vmatpush2.msra.mxu1 %v577_v46  ;;  %669 = vmatprep.subr.mxu0 %v430_v47  ;;  %v562_v60 = vld [vmem:[#allocation8 + $0x6e8] sm:$0xff]  ;;  %v409_v5 = vld [vmem:[#allocation8 + $0x220] sm:$0xff]  ;;  %v396_v47 = vld [vmem:[#allocation8 + $0x1b8] sm:$0xff] }
  0x93   :  { %738 = vmatprep.subr.mxu1 %v574_v48  ;;  %670 = vmatpush2.msra.mxu0 %v429_v49  ;;  %v414_v63 = vld [vmem:[#allocation8 + $0x248] sm:$0xff]  ;;  %v553_v6 = vld [vmem:[#allocation8 + $0x6a0] sm:$0xff]  ;;  %v364_v24 = vld [vmem:[#allocation8 + $0xb8] sm:$0xff] }
  0x94   :  { %739 = vmatpush2.msra.mxu1 %v573_v50  ;;  %671 = vmatprep.subr.mxu0 %v426_v51  ;;  %v558_v0 = vld [vmem:[#allocation8 + $0x6c8] sm:$0xff]  ;;  %v405_v9 = vld [vmem:[#allocation8 + $0x200] sm:$0xff]  ;;  %v395_v51 = vld [vmem:[#allocation8 + $0x1b0] sm:$0xff] }
  0x95   :  { %740 = vmatprep.subr.mxu1 %v570_v52  ;;  %672 = vmatpush2.msra.mxu0 %v425_v53  ;;  %v410_v3 = vld [vmem:[#allocation8 + $0x228] sm:$0xff]  ;;  %v549_v10 = vld [vmem:[#allocation8 + $0x680] sm:$0xff]  ;;  %v392_v53 = vld [vmem:[#allocation8 + $0x198] sm:$0xff] }
  0x96   :  { %741 = vmatpush2.msra.mxu1 %v569_v54  ;;  %673 = vmatprep.subr.mxu0 %v422_v55  ;;  %v554_v4 = vld [vmem:[#allocation8 + $0x6a8] sm:$0xff]  ;;  %v545_v13 = vld [vmem:[#allocation8 + $0x660] sm:$0xff]  ;;  %v391_v55 = vld [vmem:[#allocation8 + $0x190] sm:$0xff] }
  0x97   :  { %742 = vmatprep.subr.mxu1 %v566_v56  ;;  %674 = vmatpush2.msra.mxu0 %v421_v57  ;;  %v406_v7 = vld [vmem:[#allocation8 + $0x208] sm:$0xff]  ;;  %v541_v15 = vld [vmem:[#allocation8 + $0x640] sm:$0xff] }
  0x98   :  { %743 = vmatpush2.msra.mxu1 %v565_v58  ;;  %675 = vmatprep.subr.mxu0 %v418_v59  ;;  %v550_v8 = vld [vmem:[#allocation8 + $0x688] sm:$0xff]  ;;  %v537_v17 = vld [vmem:[#allocation8 + $0x620] sm:$0xff]  ;;  %v388_v58 = vld [vmem:[#allocation8 + $0x178] sm:$0xff] }
  0x99   :  { %744 = vmatprep.subr.mxu1 %v562_v60  ;;  %676 = vmatpush2.msra.mxu0 %v417_v61  ;;  %v546_v11 = vld [vmem:[#allocation8 + $0x668] sm:$0xff]  ;;  %v533_v19 = vld [vmem:[#allocation8 + $0x600] sm:$0xff]  ;;  %v387_v61 = vld [vmem:[#allocation8 + $0x170] sm:$0xff] }
  0x9a   :  { %745 = vmatpush2.msra.mxu1 %v561_v62  ;;  %677 = vmatprep.subr.mxu0 %v414_v63  ;;  %v542_v14 = vld [vmem:[#allocation8 + $0x648] sm:$0xff]  ;;  %v531_v62 = vld [vmem:[#allocation8 + $0x5f0] sm:$0xff] }
  0x9b   :  { %746 = vmatprep.subr.mxu1 %v558_v0  ;;  %678 = vmatpush2.msra.mxu0 %v413_v1  ;;  %v538_v16 = vld [vmem:[#allocation8 + $0x628] sm:$0xff]  ;;  %v384_v0 = vld [vmem:[#allocation8 + $0x158] sm:$0xff] }
  0x9c   :  { %747 = vmatpush2.msra.mxu1 %v557_v2  ;;  %679 = vmatprep.subr.mxu0 %v410_v3  ;;  %v534_v18 = vld [vmem:[#allocation8 + $0x608] sm:$0xff]  ;;  %v528_v1 = vld [vmem:[#allocation8 + $0x5d8] sm:$0xff]  ;;  %v383_v2 = vld [vmem:[#allocation8 + $0x150] sm:$0xff] }
  0x9d   :  { %748 = vmatprep.subr.mxu1 %v554_v4  ;;  %680 = vmatpush2.msra.mxu0 %v409_v5  ;;  %v527_v3 = vld [vmem:[#allocation8 + $0x5d0] sm:$0xff] }
  0x9e   :  { %749 = vmatpush2.msra.mxu1 %v553_v6  ;;  %681 = vmatprep.subr.mxu0 %v406_v7  ;;  %v380_v6 = vld [vmem:[#allocation8 + $0x138] sm:$0xff] }
  0x9f   :  { %750 = vmatprep.subr.mxu1 %v550_v8  ;;  %682 = vmatpush2.msra.mxu0 %v405_v9  ;;  %v524_v7 = vld [vmem:[#allocation8 + $0x5b8] sm:$0xff]  ;;  %v379_v8 = vld [vmem:[#allocation8 + $0x130] sm:$0xff] }
  0xa0   :  { %751 = vmatpush2.msra.mxu1 %v549_v10  ;;  %773 = vmatprep.subr.mxu0 %v404_v12  ;;  %v523_v9 = vld [vmem:[#allocation8 + $0x5b0] sm:$0xff]  ;;  %v376_v10 = vld [vmem:[#allocation8 + $0x118] sm:$0xff] }
  0xa1   :  { %752 = vmatprep.subr.mxu1 %v546_v11  ;;  %v520_v11 = vld [vmem:[#allocation8 + $0x598] sm:$0xff]  ;;  %v375_v12 = vld [vmem:[#allocation8 + $0x110] sm:$0xff] }
  0xa2   :  { %753 = vmatpush2.msra.mxu1 %v545_v13  ;;  %v519_v13 = vld [vmem:[#allocation8 + $0x590] sm:$0xff] }
  0xa3   :  { %754 = vmatprep.subr.mxu1 %v542_v14  ;;  %v372_v14 = vld [vmem:[#allocation8 + $0xf8] sm:$0xff] }
  0xa4   :  { %755 = vmatpush2.msra.mxu1 %v541_v15  ;;  %v516_v15 = vld [vmem:[#allocation8 + $0x578] sm:$0xff] }
  0xa5   :  { %756 = vmatprep.subr.mxu1 %v538_v16  ;;  %v371_v16 = vld [vmem:[#allocation8 + $0xf0] sm:$0xff] }
  0xa6   :  { %757 = vmatpush2.msra.mxu1 %v537_v17  ;;  %v515_v17 = vld [vmem:[#allocation8 + $0x570] sm:$0xff] }
  0xa7   :  { %758 = vmatprep.subr.mxu1 %v534_v18  ;;  %v368_v18 = vld [vmem:[#allocation8 + $0xd8] sm:$0xff] }
  0xa8   :  { %759 = vmatpush2.msra.mxu1 %v533_v19  ;;  %v512_v19 = vld [vmem:[#allocation8 + $0x558] sm:$0xff] }
  0xa9   :  { %850 = vmatprep.subr.mxu1 %v532_v20  ;;  %v367_v20 = vld [vmem:[#allocation8 + $0xd0] sm:$0xff] }
 0x11f   :  { %v245_v28 = vpop.f32.mrf.mxu1 }
 0x120   :  { %v2382_v29 = vadd.f32 %v245_v28, %v155_v26  ;;  %v507_v28 = vld [vmem:[#allocation8 + $0x530] sm:$0xff] }
 0x121   :  { %v247_v30 = vpop.f32.mrf.mxu1 }
 0x122   :  { %v248_v32 = vadd.f32 %v247_v30, %v159_v27  ;;  %v333_v36 = vmax.f32 %v2382_v29, 0.0  ;;  %v360_v30 = vld [vmem:[#allocation8 + $0x98] sm:$0xff] }
 0x123   :  { %v251_v34 = vpop.f32.mrf.mxu1  ;;  %v536_v29 = vld [vmem:[#allocation8 + $0x618] sm:$0xff] }
 0x124   :  { %v334_v35 = vmax.f32 %v248_v32, 0.0  ;;  %v2389_v37 = vadd.f32 %v251_v34, %v155_v26  ;;  %v508_v26 = vld [vmem:[#allocation8 + $0x538] sm:$0xff]  ;;  %v359_v34 = vld [vmem:[#allocation8 + $0x90] sm:$0xff] }
 0x125   :  { %v253_v38 = vpop.f32.mrf.mxu1  ;;  %v504_v32 = vld [vmem:[#allocation8 + $0x518] sm:$0xff] }
 0x126   :  { %v2392_v41 = vadd.f32 %v253_v38, %v159_v27  ;;  %683 = vmatprep.mubr.f32.mxu0 %v334_v35  ;;  %v337_v48 = vmax.f32 %v2389_v37, 0.0  ;;  %v363_v27 = vld [vmem:[#allocation8 + $0xb0] sm:$0xff]  ;;  %v356_v38 = vld [vmem:[#allocation8 + $0x78] sm:$0xff]  ;;  %v979_v37 = vld [vmem:[#allocation10 + $0x160] sm:$0xff] }
 0x127   :  { %v322_v44 = vpop.f32.mrf.mxu1  ;;  %684 = vmatmul.mubr.f32.vlgmr.msra.gmra.mxu0 %v333_v36 }
 0x128   :  { %v338_v46 = vmax.f32 %v2392_v41, 0.0  ;;  %774 = vmatpush1.msra.mxu0 %v403_v40  ;;  %v2399_v49 = vadd.f32 %v322_v44, %v163_v39  ;;  %v355_v40 = vld [vmem:[#allocation8 + $0x70] sm:$0xff]  ;;  %v496_v44 = vld [vmem:[#allocation8 + $0x4d8] sm:$0xff]  ;;  %v987_v41 = vld [vmem:[#allocation10 + $0x1a0] sm:$0xff] }
 0x129   :  { %775 = vmatprep.subr.mxu0 %v400_v42  ;;  %v324_v50 = vpop.f32.mrf.mxu1  ;;  %v499_v42 = vld [vmem:[#allocation8 + $0x4f0] sm:$0xff] }
 0x12a   :  { %v325_v52 = vadd.f32 %v324_v50, %v167_v43  ;;  %776 = vmatpush1.msra.mxu0 %v399_v45  ;;  %689 = vmatprep.mubr.f32.mxu0 %v338_v46  ;;  %v335_v59 = vmax.f32 %v2399_v49, 0.0  ;;  %v351_v45 = vld [vmem:[#allocation8 + $0x50] sm:$0xff]  ;;  %v348_v50 = vld [vmem:[#allocation8 + $0x38] sm:$0xff]  ;;  %v967_v49 = vld [vmem:[#allocation10 + $0x100] sm:$0xff] }
 0x12b   :  { %777 = vmatprep.subr.mxu0 %v396_v47  ;;  %v328_v54 = vpop.f32.mrf.mxu1  ;;  %690 = vmatmul.mubr.f32.gmra.mxu0 %v337_v48  ;;  %v495_v47 = vld [vmem:[#allocation8 + $0x4d0] sm:$0xff] }
 0x12c   :  { %v336_v56 = vmax.f32 %v325_v52, 0.0  ;;  %v2405_v57 = vadd.f32 %v328_v54, %v163_v39  ;;  %778 = vmatpush1.msra.mxu0 %v395_v51  ;;  %837 = vmatprep.mubr.f32.mxu0 %v334_v35  ;;  %v503_v35 = vld [vmem:[#allocation8 + $0x510] sm:$0xff]  ;;  %v500_v39 = vld [vmem:[#allocation8 + $0x4f8] sm:$0xff] }
 0x12d   :  { %779 = vmatprep.subr.mxu0 %v392_v53  ;;  %v330_v60 = vpop.f32.mrf.mxu1  ;;  %v492_v51 = vld [vmem:[#allocation8 + $0x4b8] sm:$0xff]  ;;  %v347_v52 = vld [vmem:[#allocation8 + $0x30] sm:$0xff] }
 0x12e   :  { %v2408_v63 = vadd.f32 %v330_v60, %v167_v43  ;;  %780 = vmatpush1.msra.mxu0 %v391_v55  ;;  %760 = vmatprep.mubr.f32.mxu1 %v336_v56  ;;  %v339_v4 = vmax.f32 %v2405_v57, 0.0  ;;  %v352_v43 = vld [vmem:[#allocation8 + $0x58] sm:$0xff]  ;;  %v491_v53 = vld [vmem:[#allocation8 + $0x4b0] sm:$0xff]  ;;  %v1116_v57 = vld [vmem:[#allocation10 + $0x5a8] sm:$0xff] }
 0x12f   :  { %781 = vmatprep.subr.mxu0 %v388_v58  ;;  %761 = vmatmul.mubr.f32.vlgmr.msra.gmra.mxu1 %v335_v59  ;;  %v344_v54 = vld [vmem:[#allocation8 + $0x18] sm:$0xff]  ;;  %v487_v58 = vld [vmem:[#allocation8 + $0x490] sm:$0xff] }
 0x130   :  { %v340_v5 = vmax.f32 %v2408_v63, 0.0  ;;  %782 = vmatpush1.msra.mxu0 %v387_v61  ;;  %851 = vmatpush1.msra.mxu1 %v531_v62  ;;  %v488_v55 = vld [vmem:[#allocation8 + $0x498] sm:$0xff]  ;;  %v467_v62 = vld [vmem:[#allocation8 + $0x3f0] sm:$0xff]  ;;  %v1123_v63 = vld [vmem:[#allocation10 + $0x5e0] sm:$0xff] }
 0x131   :  { %783 = vmatprep.subr.mxu0 %v384_v0  ;;  %852 = vmatprep.subr.mxu1 %v528_v1  ;;  %v468_v60 = vld [vmem:[#allocation8 + $0x3f8] sm:$0xff]  ;;  %v483_v0 = vld [vmem:[#allocation8 + $0x470] sm:$0xff] }
 0x132   :  { %784 = vmatpush1.msra.mxu0 %v383_v2  ;;  %853 = vmatpush1.msra.mxu1 %v527_v3  ;;  %v484_v61 = vld [vmem:[#allocation8 + $0x478] sm:$0xff]  ;;  %v463_v3 = vld [vmem:[#allocation8 + $0x3d0] sm:$0xff] }
 0x133   :  { %766 = vmatprep.mubr.f32.mxu1 %v340_v5  ;;  %785 = vmatprep.subr.mxu0 %v380_v6  ;;  %v464_v1 = vld [vmem:[#allocation8 + $0x3d8] sm:$0xff]  ;;  %v479_v6 = vld [vmem:[#allocation8 + $0x450] sm:$0xff] }
 0x134   :  { %854 = vmatprep.subr.mxu1 %v524_v7  ;;  %767 = vmatmul.mubr.f32.gmra.mxu1 %v339_v4  ;;  %v480_v2 = vld [vmem:[#allocation8 + $0x458] sm:$0xff] }
 0x135   :  { %786 = vmatpush1.msra.mxu0 %v379_v8  ;;  %855 = vmatpush1.msra.mxu1 %v523_v9  ;;  %v460_v7 = vld [vmem:[#allocation8 + $0x3b8] sm:$0xff]  ;;  %v459_v9 = vld [vmem:[#allocation8 + $0x3b0] sm:$0xff] }
 0x136   :  { %787 = vmatprep.subr.mxu0 %v376_v10  ;;  %856 = vmatprep.subr.mxu1 %v520_v11  ;;  %v476_v8 = vld [vmem:[#allocation8 + $0x438] sm:$0xff]  ;;  %v475_v10 = vld [vmem:[#allocation8 + $0x430] sm:$0xff] }
 0x137   :  { %914 = vmatprep.mubr.f32.mxu1 %v336_v56  ;;  %788 = vmatpush1.msra.mxu0 %v375_v12  ;;  %v343_v56 = vld [vmem:[#allocation8 + $0x10] sm:$0xff]  ;;  %v456_v11 = vld [vmem:[#allocation8 + $0x398] sm:$0xff] }
 0x138   :  { %857 = vmatpush1.msra.mxu1 %v519_v13  ;;  %789 = vmatprep.subr.mxu0 %v372_v14  ;;  %v472_v12 = vld [vmem:[#allocation8 + $0x418] sm:$0xff]  ;;  %v455_v13 = vld [vmem:[#allocation8 + $0x390] sm:$0xff] }
 0x139   :  { %858 = vmatprep.subr.mxu1 %v516_v15  ;;  %790 = vmatpush1.msra.mxu0 %v371_v16  ;;  %v471_v14 = vld [vmem:[#allocation8 + $0x410] sm:$0xff]  ;;  %v452_v15 = vld [vmem:[#allocation8 + $0x378] sm:$0xff] }
 0x13a   :  { %859 = vmatpush1.msra.mxu1 %v515_v17  ;;  %791 = vmatprep.subr.mxu0 %v368_v18  ;;  %v596_v16 = vld [vmem:[#allocation8 + $0x7f8] sm:$0xff]  ;;  %v451_v17 = vld [vmem:[#allocation8 + $0x370] sm:$0xff] }
 0x13b   :  { %860 = vmatprep.subr.mxu1 %v512_v19  ;;  %792 = vmatpush1.msra.mxu0 %v367_v20  ;;  %v595_v18 = vld [vmem:[#allocation8 + $0x7f0] sm:$0xff]  ;;  %v448_v19 = vld [vmem:[#allocation8 + $0x358] sm:$0xff] }
 0x13c   :  { %861 = vmatpush1.msra.mxu1 %v511_v22  ;;  %793 = vmatprep.subr.mxu0 %v364_v24  ;;  %v592_v20 = vld [vmem:[#allocation8 + $0x7d8] sm:$0xff]  ;;  %v447_v22 = vld [vmem:[#allocation8 + $0x350] sm:$0xff] }
 0x13d   :  { %862 = vmatprep.subr.mxu1 %v508_v26  ;;  %794 = vmatpush1.msra.mxu0 %v363_v27  ;;  %v591_v24 = vld [vmem:[#allocation8 + $0x7d0] sm:$0xff]  ;;  %v444_v26 = vld [vmem:[#allocation8 + $0x338] sm:$0xff] }
 0x13e   :  { %863 = vmatpush1.msra.mxu1 %v507_v28  ;;  %795 = vmatprep.subr.mxu0 %v360_v30  ;;  %v588_v27 = vld [vmem:[#allocation8 + $0x7b8] sm:$0xff]  ;;  %v443_v28 = vld [vmem:[#allocation8 + $0x330] sm:$0xff] }
 0x13f   :  { %864 = vmatprep.subr.mxu1 %v504_v32  ;;  %796 = vmatpush1.msra.mxu0 %v359_v34  ;;  %v587_v30 = vld [vmem:[#allocation8 + $0x7b0] sm:$0xff]  ;;  %v440_v32 = vld [vmem:[#allocation8 + $0x318] sm:$0xff] }
 0x140   :  { %865 = vmatpush1.msra.mxu1 %v503_v35  ;;  %797 = vmatprep.subr.mxu0 %v356_v38  ;;  %v584_v34 = vld [vmem:[#allocation8 + $0x798] sm:$0xff]  ;;  %v439_v35 = vld [vmem:[#allocation8 + $0x310] sm:$0xff] }
 0x141   :  { %866 = vmatprep.subr.mxu1 %v500_v39  ;;  %798 = vmatpush1.msra.mxu0 %v355_v40  ;;  %v583_v38 = vld [vmem:[#allocation8 + $0x790] sm:$0xff]  ;;  %v436_v39 = vld [vmem:[#allocation8 + $0x2f8] sm:$0xff] }
 0x142   :  { %867 = vmatpush1.msra.mxu1 %v499_v42  ;;  %799 = vmatprep.subr.mxu0 %v352_v43  ;;  %v580_v40 = vld [vmem:[#allocation8 + $0x778] sm:$0xff]  ;;  %v435_v42 = vld [vmem:[#allocation8 + $0x2f0] sm:$0xff] }
 0x143   :  { %868 = vmatprep.subr.mxu1 %v496_v44  ;;  %800 = vmatpush1.msra.mxu0 %v351_v45  ;;  %v579_v43 = vld [vmem:[#allocation8 + $0x770] sm:$0xff]  ;;  %v432_v44 = vld [vmem:[#allocation8 + $0x2d8] sm:$0xff] }
 0x144   :  { %869 = vmatpush1.msra.mxu1 %v495_v47  ;;  %801 = vmatprep.subr.mxu0 %v348_v50  ;;  %v576_v45 = vld [vmem:[#allocation8 + $0x758] sm:$0xff]  ;;  %v431_v47 = vld [vmem:[#allocation8 + $0x2d0] sm:$0xff] }
 0x145   :  { %870 = vmatprep.subr.mxu1 %v492_v51  ;;  %802 = vmatpush1.msra.mxu0 %v347_v52  ;;  %v575_v50 = vld [vmem:[#allocation8 + $0x750] sm:$0xff]  ;;  %v428_v51 = vld [vmem:[#allocation8 + $0x2b8] sm:$0xff] }
 0x146   :  { %871 = vmatpush1.msra.mxu1 %v491_v53  ;;  %803 = vmatprep.subr.mxu0 %v344_v54  ;;  %v572_v52 = vld [vmem:[#allocation8 + $0x738] sm:$0xff]  ;;  %v427_v53 = vld [vmem:[#allocation8 + $0x2b0] sm:$0xff] }
 0x147   :  { %872 = vmatprep.subr.mxu1 %v488_v55  ;;  %804 = vmatpush1.msra.mxu0 %v343_v56  ;;  %v571_v54 = vld [vmem:[#allocation8 + $0x730] sm:$0xff]  ;;  %v424_v55 = vld [vmem:[#allocation8 + $0x298] sm:$0xff] }
 0x148   :  { %873 = vmatpush1.msra.mxu1 %v487_v58  ;;  %805 = vmatprep.subr.mxu0 %v468_v60  ;;  %v568_v56 = vld [vmem:[#allocation8 + $0x718] sm:$0xff]  ;;  %v423_v58 = vld [vmem:[#allocation8 + $0x290] sm:$0xff] }
 0x149   :  { %874 = vmatprep.subr.mxu1 %v484_v61  ;;  %806 = vmatpush2.msra.mxu0 %v467_v62  ;;  %v567_v60 = vld [vmem:[#allocation8 + $0x710] sm:$0xff]  ;;  %v420_v61 = vld [vmem:[#allocation8 + $0x278] sm:$0xff] }
 0x14a   :  { %875 = vmatpush1.msra.mxu1 %v483_v0  ;;  %807 = vmatprep.subr.mxu0 %v464_v1  ;;  %v564_v62 = vld [vmem:[#allocation8 + $0x6f8] sm:$0xff]  ;;  %v419_v0 = vld [vmem:[#allocation8 + $0x270] sm:$0xff] }
 0x14b   :  { %876 = vmatprep.subr.mxu1 %v480_v2  ;;  %808 = vmatpush2.msra.mxu0 %v463_v3  ;;  %v563_v1 = vld [vmem:[#allocation8 + $0x6f0] sm:$0xff]  ;;  %v416_v2 = vld [vmem:[#allocation8 + $0x258] sm:$0xff] }
 0x14c   :  { %877 = vmatpush1.msra.mxu1 %v479_v6  ;;  %809 = vmatprep.subr.mxu0 %v460_v7  ;;  %v560_v3 = vld [vmem:[#allocation8 + $0x6d8] sm:$0xff]  ;;  %v415_v6 = vld [vmem:[#allocation8 + $0x250] sm:$0xff] }
 0x14d   :  { %878 = vmatprep.subr.mxu1 %v476_v8  ;;  %810 = vmatpush2.msra.mxu0 %v459_v9  ;;  %v559_v7 = vld [vmem:[#allocation8 + $0x6d0] sm:$0xff]  ;;  %v412_v8 = vld [vmem:[#allocation8 + $0x238] sm:$0xff] }
 0x14e   :  { %879 = vmatpush1.msra.mxu1 %v475_v10  ;;  %811 = vmatprep.subr.mxu0 %v456_v11  ;;  %v556_v9 = vld [vmem:[#allocation8 + $0x6b8] sm:$0xff]  ;;  %v411_v10 = vld [vmem:[#allocation8 + $0x230] sm:$0xff] }
 0x14f   :  { %880 = vmatprep.subr.mxu1 %v472_v12  ;;  %812 = vmatpush2.msra.mxu0 %v455_v13  ;;  %v555_v11 = vld [vmem:[#allocation8 + $0x6b0] sm:$0xff]  ;;  %v408_v12 = vld [vmem:[#allocation8 + $0x218] sm:$0xff] }
 0x150   :  { %881 = vmatpush1.msra.mxu1 %v471_v14  ;;  %813 = vmatprep.subr.mxu0 %v452_v15  ;;  %v552_v13 = vld [vmem:[#allocation8 + $0x698] sm:$0xff]  ;;  %v407_v14 = vld [vmem:[#allocation8 + $0x210] sm:$0xff] }
 0x151   :  { %882 = vmatprep.subr.mxu1 %v596_v16  ;;  %814 = vmatpush2.msra.mxu0 %v451_v17  ;;  %v551_v15 = vld [vmem:[#allocation8 + $0x690] sm:$0xff]  ;;  %v548_v16 = vld [vmem:[#allocation8 + $0x678] sm:$0xff] }
 0x152   :  { %883 = vmatpush2.msra.mxu1 %v595_v18  ;;  %815 = vmatprep.subr.mxu0 %v448_v19  ;;  %v547_v17 = vld [vmem:[#allocation8 + $0x670] sm:$0xff]  ;;  %v996_v18 = vld [vmem:[#allocation10 + $0x1e8] sm:$0xff]  ;;  %v544_v19 = vld [vmem:[#allocation8 + $0x658] sm:$0xff] }
 0x153   :  { %884 = vmatprep.subr.mxu1 %v592_v20  ;;  %816 = vmatpush2.msra.mxu0 %v447_v22  ;;  %v995_v20 = vld [vmem:[#allocation10 + $0x1e0] sm:$0xff]  ;;  %v543_v22 = vld [vmem:[#allocation8 + $0x650] sm:$0xff] }
 0x154   :  { %885 = vmatpush2.msra.mxu1 %v591_v24  ;;  %817 = vmatprep.subr.mxu0 %v444_v26  ;;  %v540_v24 = vld [vmem:[#allocation8 + $0x638] sm:$0xff]  ;;  %v992_v26 = vld [vmem:[#allocation10 + $0x1c8] sm:$0xff] }
 0x155   :  { %886 = vmatprep.subr.mxu1 %v588_v27  ;;  %818 = vmatpush2.msra.mxu0 %v443_v28  ;;  %v539_v27 = vld [vmem:[#allocation8 + $0x630] sm:$0xff]  ;;  %v991_v28 = vld [vmem:[#allocation10 + $0x1c0] sm:$0xff] }
 0x156   :  { %887 = vmatpush2.msra.mxu1 %v587_v30  ;;  %819 = vmatprep.subr.mxu0 %v440_v32  ;;  %v535_v30 = vld [vmem:[#allocation8 + $0x610] sm:$0xff]  ;;  %v983_v32 = vld [vmem:[#allocation10 + $0x180] sm:$0xff] }
 0x157   :  { %888 = vmatprep.subr.mxu1 %v584_v34  ;;  %820 = vmatpush2.msra.mxu0 %v439_v35  ;;  %v980_v34 = vld [vmem:[#allocation10 + $0x168] sm:$0xff]  ;;  %v975_v35 = vld [vmem:[#allocation10 + $0x140] sm:$0xff] }
 0x158   :  { %889 = vmatpush2.msra.mxu1 %v583_v38  ;;  %821 = vmatprep.subr.mxu0 %v436_v39  ;;  %v972_v38 = vld [vmem:[#allocation10 + $0x128] sm:$0xff]  ;;  %v971_v39 = vld [vmem:[#allocation10 + $0x120] sm:$0xff] }
 0x159   :  { %890 = vmatprep.subr.mxu1 %v580_v40  ;;  %822 = vmatpush2.msra.mxu0 %v435_v42  ;;  %v968_v40 = vld [vmem:[#allocation10 + $0x108] sm:$0xff] }
 0x15a   :  { %891 = vmatpush2.msra.mxu1 %v579_v43  ;;  %823 = vmatprep.subr.mxu0 %v432_v44  ;;  %v964_v42 = vld [vmem:[#allocation10 + $0xe8] sm:$0xff]  ;;  %v1119_v44 = vld [vmem:[#allocation10 + $0x5c0] sm:$0xff] }
 0x15b   :  { %892 = vmatprep.subr.mxu1 %v576_v45  ;;  %824 = vmatpush2.msra.mxu0 %v431_v47  ;;  %v1120_v43 = vld [vmem:[#allocation10 + $0x5c8] sm:$0xff]  ;;  %v1115_v47 = vld [vmem:[#allocation10 + $0x5a0] sm:$0xff] }
 0x15c   :  { %893 = vmatpush2.msra.mxu1 %v575_v50  ;;  %825 = vmatprep.subr.mxu0 %v428_v51  ;;  %v960_v45 = vld [vmem:[#allocation10 + $0xc8] sm:$0xff] }
 0x15d   :  { %894 = vmatprep.subr.mxu1 %v572_v52  ;;  %826 = vmatpush2.msra.mxu0 %v427_v53  ;;  %v956_v50 = vld [vmem:[#allocation10 + $0xa8] sm:$0xff]  ;;  %v955_v52 = vld [vmem:[#allocation10 + $0xa0] sm:$0xff] }
 0x15e   :  { %895 = vmatpush2.msra.mxu1 %v571_v54  ;;  %827 = vmatprep.subr.mxu0 %v424_v55  ;;  %v1112_v51 = vld [vmem:[#allocation10 + $0x588] sm:$0xff]  ;;  %v1111_v53 = vld [vmem:[#allocation10 + $0x580] sm:$0xff] }
 0x15f   :  { %896 = vmatprep.subr.mxu1 %v568_v56  ;;  %828 = vmatpush2.msra.mxu0 %v423_v58  ;;  %v952_v54 = vld [vmem:[#allocation10 + $0x88] sm:$0xff]  ;;  %v951_v56 = vld [vmem:[#allocation10 + $0x80] sm:$0xff] }
 0x160   :  { %897 = vmatpush2.msra.mxu1 %v567_v60  ;;  %829 = vmatprep.subr.mxu0 %v420_v61  ;;  %v1108_v55 = vld [vmem:[#allocation10 + $0x568] sm:$0xff]  ;;  %v1107_v58 = vld [vmem:[#allocation10 + $0x560] sm:$0xff] }
 0x161   :  { %898 = vmatprep.subr.mxu1 %v564_v62  ;;  %830 = vmatpush2.msra.mxu0 %v419_v0  ;;  %v948_v60 = vld [vmem:[#allocation10 + $0x68] sm:$0xff]  ;;  %v947_v62 = vld [vmem:[#allocation10 + $0x60] sm:$0xff] }
 0x162   :  { %899 = vmatpush2.msra.mxu1 %v563_v1  ;;  %831 = vmatprep.subr.mxu0 %v416_v2  ;;  %v1104_v61 = vld [vmem:[#allocation10 + $0x548] sm:$0xff]  ;;  %v1103_v0 = vld [vmem:[#allocation10 + $0x540] sm:$0xff] }
 0x163   :  { %900 = vmatprep.subr.mxu1 %v560_v3  ;;  %832 = vmatpush2.msra.mxu0 %v415_v6  ;;  %v944_v1 = vld [vmem:[#allocation10 + $0x48] sm:$0xff]  ;;  %v943_v3 = vld [vmem:[#allocation10 + $0x40] sm:$0xff] }
 0x164   :  { %901 = vmatpush2.msra.mxu1 %v559_v7  ;;  %833 = vmatprep.subr.mxu0 %v412_v8  ;;  %v1100_v2 = vld [vmem:[#allocation10 + $0x528] sm:$0xff]  ;;  %v1099_v6 = vld [vmem:[#allocation10 + $0x520] sm:$0xff] }
 0x165   :  { %902 = vmatprep.subr.mxu1 %v556_v9  ;;  %834 = vmatpush2.msra.mxu0 %v411_v10  ;;  %v940_v7 = vld [vmem:[#allocation10 + $0x28] sm:$0xff]  ;;  %v939_v9 = vld [vmem:[#allocation10 + $0x20] sm:$0xff] }
 0x166   :  { %903 = vmatpush2.msra.mxu1 %v555_v11  ;;  %835 = vmatprep.subr.mxu0 %v408_v12  ;;  %v1096_v8 = vld [vmem:[#allocation10 + $0x508] sm:$0xff]  ;;  %v1095_v10 = vld [vmem:[#allocation10 + $0x500] sm:$0xff] }
 0x167   :  { %904 = vmatprep.subr.mxu1 %v552_v13  ;;  %836 = vmatpush2.msra.mxu0 %v407_v14  ;;  %v936_v11 = vld [vmem:[#allocation10 + $0x8] sm:$0xff]  ;;  %v935_v13 = vld [vmem:[#allocation10] sm:$0xff] }
 0x168   :  { %905 = vmatpush2.msra.mxu1 %v551_v15  ;;  %838 = vmatmul.mubr.f32.vlgmr.msra.gmra.mxu0 %v333_v36  ;;  %v988_v36 = vld [vmem:[#allocation10 + $0x1a8] sm:$0xff]  ;;  %v1091_v14 = vld [vmem:[#allocation10 + $0x4e0] sm:$0xff] }
 0x169   :  { %906 = vmatprep.subr.mxu1 %v548_v16  ;;  %843 = vmatprep.mubr.f32.mxu0 %v338_v46  ;;  %v984_v46 = vld [vmem:[#allocation10 + $0x188] sm:$0xff] }
 0x16a   :  { %907 = vmatpush2.msra.mxu1 %v547_v17  ;;  %1213 = vmatprep.subr.mxu0 %v996_v18  ;;  %v1092_v12 = vld [vmem:[#allocation10 + $0x4e8] sm:$0xff]  ;;  %v1059_v17 = vld [vmem:[#allocation10 + $0x3e0] sm:$0xff] }
 0x16b   :  { %908 = vmatprep.subr.mxu1 %v544_v19  ;;  %1214 = vmatpush1.msra.mxu0 %v995_v20  ;;  %v1060_v15 = vld [vmem:[#allocation10 + $0x3e8] sm:$0xff]  ;;  %v1087_v18 = vld [vmem:[#allocation10 + $0x4c0] sm:$0xff] }
 0x16c   :  { %909 = vmatpush2.msra.mxu1 %v543_v22  ;;  %844 = vmatmul.mubr.f32.gmra.mxu0 %v337_v48  ;;  %v976_v48 = vld [vmem:[#allocation10 + $0x148] sm:$0xff]  ;;  %v1055_v22 = vld [vmem:[#allocation10 + $0x3c0] sm:$0xff] }
 0x16d   :  { %910 = vmatprep.subr.mxu1 %v540_v24  ;;  %1215 = vmatprep.subr.mxu0 %v992_v26  ;;  %v1088_v16 = vld [vmem:[#allocation10 + $0x4c8] sm:$0xff]  ;;  %v1083_v24 = vld [vmem:[#allocation10 + $0x4a0] sm:$0xff] }
 0x16e   :  { %911 = vmatpush2.msra.mxu1 %v539_v27  ;;  %1216 = vmatpush1.msra.mxu0 %v991_v28  ;;  %v1056_v19 = vld [vmem:[#allocation10 + $0x3c8] sm:$0xff]  ;;  %v1051_v28 = vld [vmem:[#allocation10 + $0x3a0] sm:$0xff] }
 0x16f   :  { %912 = vmatprep.subr.mxu1 %v536_v29  ;;  %1217 = vmatprep.subr.mxu0 %v988_v36  ;;  %v1084_v20 = vld [vmem:[#allocation10 + $0x4a8] sm:$0xff]  ;;  %v1079_v29 = vld [vmem:[#allocation10 + $0x480] sm:$0xff] }
 0x170   :  { %913 = vmatpush2.msra.mxu1 %v535_v30  ;;  %1218 = vmatpush1.msra.mxu0 %v987_v41  ;;  %v1052_v26 = vld [vmem:[#allocation10 + $0x3a8] sm:$0xff]  ;;  %v1047_v41 = vld [vmem:[#allocation10 + $0x380] sm:$0xff] }
 0x171   :  { %915 = vmatmul.mubr.f32.vlgmr.msra.gmra.mxu1 %v335_v59  ;;  %1219 = vmatprep.subr.mxu0 %v984_v46  ;;  %v1124_v59 = vld [vmem:[#allocation10 + $0x5e8] sm:$0xff]  ;;  %v1075_v46 = vld [vmem:[#allocation10 + $0x460] sm:$0xff] }
 0x172   :  { %920 = vmatprep.mubr.f32.mxu1 %v340_v5  ;;  %1220 = vmatpush1.msra.mxu0 %v983_v32  ;;  %v963_v5 = vld [vmem:[#allocation10 + $0xe0] sm:$0xff]  ;;  %v1080_v27 = vld [vmem:[#allocation10 + $0x488] sm:$0xff] }
 0x173   :  { %1221 = vmatprep.subr.mxu0 %v980_v34  ;;  %1290 = vmatprep.subr.mxu1 %v1124_v59  ;;  %v1048_v36 = vld [vmem:[#allocation10 + $0x388] sm:$0xff] }
 0x174   :  { %1222 = vmatpush1.msra.mxu0 %v979_v37  ;;  %1291 = vmatpush1.msra.mxu1 %v1123_v63  ;;  %v1076_v30 = vld [vmem:[#allocation10 + $0x468] sm:$0xff]  ;;  %v1043_v37 = vld [vmem:[#allocation10 + $0x360] sm:$0xff] }
 0x175   :  { %921 = vmatmul.mubr.f32.gmra.mxu1 %v339_v4  ;;  %1223 = vmatprep.subr.mxu0 %v976_v48  ;;  %v959_v4 = vld [vmem:[#allocation10 + $0xc0] sm:$0xff]  ;;  %v1044_v32 = vld [vmem:[#allocation10 + $0x368] sm:$0xff] }
 0x176   :  { %1224 = vmatpush1.msra.mxu0 %v975_v35  ;;  %1292 = vmatprep.subr.mxu1 %v1120_v43  ;;  %v1072_v34 = vld [vmem:[#allocation10 + $0x448] sm:$0xff]  ;;  %v1071_v48 = vld [vmem:[#allocation10 + $0x440] sm:$0xff] }
 0x177   :  { %1225 = vmatprep.subr.mxu0 %v972_v38  ;;  %1293 = vmatpush1.msra.mxu1 %v1119_v44  ;;  %v1040_v35 = vld [vmem:[#allocation10 + $0x348] sm:$0xff]  ;;  %v1063_v63 = vld [vmem:[#allocation10 + $0x400] sm:$0xff] }
 0x178   :  { %1226 = vmatpush1.msra.mxu0 %v971_v39  ;;  %1294 = vmatprep.subr.mxu1 %v1116_v57  ;;  %v1068_v38 = vld [vmem:[#allocation10 + $0x428] sm:$0xff]  ;;  %v1039_v39 = vld [vmem:[#allocation10 + $0x340] sm:$0xff] }
 0x179   :  { %1227 = vmatprep.subr.mxu0 %v968_v40  ;;  %1295 = vmatpush1.msra.mxu1 %v1115_v47  ;;  %v1067_v40 = vld [vmem:[#allocation10 + $0x420] sm:$0xff]  ;;  %v1064_v59 = vld [vmem:[#allocation10 + $0x408] sm:$0xff] }
 0x17a   :  { %1228 = vmatpush1.msra.mxu0 %v967_v49  ;;  %1296 = vmatprep.subr.mxu1 %v1112_v51  ;;  %v1036_v49 = vld [vmem:[#allocation10 + $0x328] sm:$0xff]  ;;  %v1031_v44 = vld [vmem:[#allocation10 + $0x300] sm:$0xff] }
 0x17b   :  { %1229 = vmatprep.subr.mxu0 %v964_v42  ;;  %1297 = vmatpush1.msra.mxu1 %v1111_v53  ;;  %v1035_v42 = vld [vmem:[#allocation10 + $0x320] sm:$0xff]  ;;  %v1188_v43 = vld [vmem:[#allocation10 + $0x7e8] sm:$0xff] }
 0x17c   :  { %1230 = vmatpush1.msra.mxu0 %v963_v5  ;;  %1298 = vmatprep.subr.mxu1 %v1108_v55  ;;  %v1032_v5 = vld [vmem:[#allocation10 + $0x308] sm:$0xff]  ;;  %v1027_v47 = vld [vmem:[#allocation10 + $0x2e0] sm:$0xff] }
 0x17d   :  { %1231 = vmatprep.subr.mxu0 %v960_v45  ;;  %1299 = vmatpush1.msra.mxu1 %v1107_v58  ;;  %v1187_v45 = vld [vmem:[#allocation10 + $0x7e0] sm:$0xff]  ;;  %v1028_v57 = vld [vmem:[#allocation10 + $0x2e8] sm:$0xff] }
 0x17e   :  { %1232 = vmatpush1.msra.mxu0 %v959_v4  ;;  %1300 = vmatprep.subr.mxu1 %v1104_v61  ;;  %v1184_v4 = vld [vmem:[#allocation10 + $0x7c8] sm:$0xff]  ;;  %v1023_v53 = vld [vmem:[#allocation10 + $0x2c0] sm:$0xff] }
 0x17f   :  { %1233 = vmatprep.subr.mxu0 %v956_v50  ;;  %1301 = vmatpush1.msra.mxu1 %v1103_v0  ;;  %v1183_v50 = vld [vmem:[#allocation10 + $0x7c0] sm:$0xff]  ;;  %v1024_v51 = vld [vmem:[#allocation10 + $0x2c8] sm:$0xff] }
 0x180   :  { %1234 = vmatpush1.msra.mxu0 %v955_v52  ;;  %1302 = vmatprep.subr.mxu1 %v1100_v2  ;;  %v1180_v52 = vld [vmem:[#allocation10 + $0x7a8] sm:$0xff]  ;;  %v1019_v58 = vld [vmem:[#allocation10 + $0x2a0] sm:$0xff] }
 0x181   :  { %1235 = vmatprep.subr.mxu0 %v952_v54  ;;  %1303 = vmatpush1.msra.mxu1 %v1099_v6  ;;  %v1179_v54 = vld [vmem:[#allocation10 + $0x7a0] sm:$0xff]  ;;  %v1020_v55 = vld [vmem:[#allocation10 + $0x2a8] sm:$0xff] }
 0x182   :  { %1236 = vmatpush1.msra.mxu0 %v951_v56  ;;  %1304 = vmatprep.subr.mxu1 %v1096_v8  ;;  %v1176_v56 = vld [vmem:[#allocation10 + $0x788] sm:$0xff]  ;;  %v1015_v0 = vld [vmem:[#allocation10 + $0x280] sm:$0xff] }
 0x183   :  { %1237 = vmatprep.subr.mxu0 %v948_v60  ;;  %1305 = vmatpush1.msra.mxu1 %v1095_v10  ;;  %v1175_v60 = vld [vmem:[#allocation10 + $0x780] sm:$0xff]  ;;  %v1016_v61 = vld [vmem:[#allocation10 + $0x288] sm:$0xff] }
 0x184   :  { %1238 = vmatpush1.msra.mxu0 %v947_v62  ;;  %1306 = vmatprep.subr.mxu1 %v1092_v12  ;;  %v1172_v62 = vld [vmem:[#allocation10 + $0x768] sm:$0xff]  ;;  %v1011_v6 = vld [vmem:[#allocation10 + $0x260] sm:$0xff] }
 0x185   :  { %1239 = vmatprep.subr.mxu0 %v944_v1  ;;  %1307 = vmatpush1.msra.mxu1 %v1091_v14  ;;  %v1171_v1 = vld [vmem:[#allocation10 + $0x760] sm:$0xff]  ;;  %v1012_v2 = vld [vmem:[#allocation10 + $0x268] sm:$0xff] }
 0x186   :  { %1240 = vmatpush1.msra.mxu0 %v943_v3  ;;  %1308 = vmatprep.subr.mxu1 %v1088_v16  ;;  %v1168_v3 = vld [vmem:[#allocation10 + $0x748] sm:$0xff]  ;;  %v1007_v10 = vld [vmem:[#allocation10 + $0x240] sm:$0xff] }
 0x187   :  { %1241 = vmatprep.subr.mxu0 %v940_v7  ;;  %1309 = vmatpush1.msra.mxu1 %v1087_v18  ;;  %v1167_v7 = vld [vmem:[#allocation10 + $0x740] sm:$0xff]  ;;  %v1008_v8 = vld [vmem:[#allocation10 + $0x248] sm:$0xff] }
 0x188   :  { %1242 = vmatpush1.msra.mxu0 %v939_v9  ;;  %1310 = vmatprep.subr.mxu1 %v1084_v20  ;;  %v1164_v9 = vld [vmem:[#allocation10 + $0x728] sm:$0xff]  ;;  %v1003_v14 = vld [vmem:[#allocation10 + $0x220] sm:$0xff] }
 0x189   :  { %1243 = vmatprep.subr.mxu0 %v936_v11  ;;  %1311 = vmatpush1.msra.mxu1 %v1083_v24  ;;  %v1163_v11 = vld [vmem:[#allocation10 + $0x720] sm:$0xff]  ;;  %v1004_v12 = vld [vmem:[#allocation10 + $0x228] sm:$0xff] }
 0x18a   :  { %1244 = vmatpush1.msra.mxu0 %v935_v13  ;;  %1312 = vmatprep.subr.mxu1 %v1080_v27  ;;  %v1160_v13 = vld [vmem:[#allocation10 + $0x708] sm:$0xff]  ;;  %v999_v18 = vld [vmem:[#allocation10 + $0x200] sm:$0xff] }
 0x18b   :  { %1245 = vmatprep.subr.mxu0 %v1060_v15  ;;  %1313 = vmatpush1.msra.mxu1 %v1079_v29  ;;  %v1159_v15 = vld [vmem:[#allocation10 + $0x700] sm:$0xff]  ;;  %v1000_v16 = vld [vmem:[#allocation10 + $0x208] sm:$0xff] }
 0x18c   :  { %1246 = vmatpush2.msra.mxu0 %v1059_v17  ;;  %1314 = vmatprep.subr.mxu1 %v1076_v30  ;;  %v1156_v17 = vld [vmem:[#allocation10 + $0x6e8] sm:$0xff]  ;;  %v1155_v20 = vld [vmem:[#allocation10 + $0x6e0] sm:$0xff] }
 0x18d   :  { %1247 = vmatprep.subr.mxu0 %v1056_v19  ;;  %1315 = vmatpush1.msra.mxu1 %v1075_v46  ;;  %v998_v19 = vld [vmem:[#allocation10 + $0x1f8] sm:$0xff]  ;;  %v1151_v24 = vld [vmem:[#allocation10 + $0x6c0] sm:$0xff] }
 0x18e   :  { %1248 = vmatpush2.msra.mxu0 %v1055_v22  ;;  %1316 = vmatprep.subr.mxu1 %v1072_v34  ;;  %v1152_v22 = vld [vmem:[#allocation10 + $0x6c8] sm:$0xff]  ;;  %v1147_v27 = vld [vmem:[#allocation10 + $0x6a0] sm:$0xff] }
 0x18f   :  { %1249 = vmatprep.subr.mxu0 %v1052_v26  ;;  %1317 = vmatpush1.msra.mxu1 %v1071_v48  ;;  %v1148_v26 = vld [vmem:[#allocation10 + $0x6a8] sm:$0xff]  ;;  %v1143_v29 = vld [vmem:[#allocation10 + $0x680] sm:$0xff] }
 0x190   :  { %1250 = vmatpush2.msra.mxu0 %v1051_v28  ;;  %1318 = vmatprep.subr.mxu1 %v1068_v38  ;;  %v1144_v28 = vld [vmem:[#allocation10 + $0x688] sm:$0xff]  ;;  %v1139_v30 = vld [vmem:[#allocation10 + $0x660] sm:$0xff] }
 0x191   :  { %1251 = vmatprep.subr.mxu0 %v1048_v36  ;;  %1319 = vmatpush1.msra.mxu1 %v1067_v40  ;;  %v1140_v36 = vld [vmem:[#allocation10 + $0x668] sm:$0xff]  ;;  %v1135_v46 = vld [vmem:[#allocation10 + $0x640] sm:$0xff] }
 0x192   :  { %1252 = vmatpush2.msra.mxu0 %v1047_v41  ;;  %1320 = vmatprep.subr.mxu1 %v1064_v59  ;;  %v1136_v41 = vld [vmem:[#allocation10 + $0x648] sm:$0xff]  ;;  %v1131_v34 = vld [vmem:[#allocation10 + $0x620] sm:$0xff] }
 0x193   :  { %1253 = vmatprep.subr.mxu0 %v1044_v32  ;;  %1321 = vmatpush1.msra.mxu1 %v1063_v63  ;;  %v1132_v32 = vld [vmem:[#allocation10 + $0x628] sm:$0xff]  ;;  %v1127_v48 = vld [vmem:[#allocation10 + $0x600] sm:$0xff] }
 0x194   :  { %1254 = vmatpush2.msra.mxu0 %v1043_v37  ;;  %1322 = vmatprep.subr.mxu1 %v1188_v43  ;;  %v1128_v37 = vld [vmem:[#allocation10 + $0x608] sm:$0xff] }
 0x195   :  { %1255 = vmatprep.subr.mxu0 %v1040_v35  ;;  %1323 = vmatpush2.msra.mxu1 %v1187_v45  ;;  %v1126_v35 = vld [vmem:[#allocation10 + $0x5f8] sm:$0xff] }
 0x196   :  { %1256 = vmatpush2.msra.mxu0 %v1039_v39  ;;  %1324 = vmatprep.subr.mxu1 %v1184_v4  ;;  %v2433_v39 = vld [vmem:[%s2515_s4] sm:$0xf] }
 0x197   :  { %1257 = vmatprep.subr.mxu0 %v1036_v49  ;;  %1325 = vmatpush2.msra.mxu1 %v1183_v50  ;;  %v602_v49 = vrot.slane %v2433_v39, %v2376_v23  ;;  %v606_v59 = vrot.slane %v2433_v39, %v2378_v25 }
 0x198   :  { %1258 = vmatpush2.msra.mxu0 %v1035_v42  ;;  %1326 = vmatprep.subr.mxu1 %v1180_v52 }
 0x199   :  { %1259 = vmatprep.subr.mxu0 %v1032_v5  ;;  %1327 = vmatpush2.msra.mxu1 %v1179_v54  ;;  %v997_v54 = vld [vmem:[#allocation10 + $0x1f0] sm:$0xff] }
 0x19a   :  { %1260 = vmatpush2.msra.mxu0 %v1031_v44  ;;  %1328 = vmatprep.subr.mxu1 %v1176_v56 }
 0x19b   :  { %1261 = vmatprep.subr.mxu0 %v1028_v57  ;;  %1329 = vmatpush2.msra.mxu1 %v1175_v60 }
 0x19c   :  { %1262 = vmatpush2.msra.mxu0 %v1027_v47  ;;  %1330 = vmatprep.subr.mxu1 %v1172_v62  ;;  %v990_v62 = vld [vmem:[#allocation10 + $0x1b8] sm:$0xff] }
 0x19d   :  { %1263 = vmatprep.subr.mxu0 %v1024_v51  ;;  %1331 = vmatpush2.msra.mxu1 %v1171_v1 }
 0x19e   :  { %1264 = vmatpush2.msra.mxu0 %v1023_v53  ;;  %1332 = vmatprep.subr.mxu1 %v1168_v3  ;;  %v986_v3 = vld [vmem:[#allocation10 + $0x198] sm:$0xff] }
 0x19f   :  { %1265 = vmatprep.subr.mxu0 %v1020_v55  ;;  %1333 = vmatpush2.msra.mxu1 %v1167_v7  ;;  %v982_v7 = vld [vmem:[#allocation10 + $0x178] sm:$0xff] }
 0x1a0   :  { %1266 = vmatpush2.msra.mxu0 %v1019_v58  ;;  %1334 = vmatprep.subr.mxu1 %v1164_v9  ;;  %v994_v58 = vld [vmem:[#allocation10 + $0x1d8] sm:$0xff] }
 0x1a1   :  { %1267 = vmatprep.subr.mxu0 %v1016_v61  ;;  %1335 = vmatpush2.msra.mxu1 %v1163_v11  ;;  %v993_v61 = vld [vmem:[#allocation10 + $0x1d0] sm:$0xff]  ;;  %v978_v9 = vld [vmem:[#allocation10 + $0x158] sm:$0xff] }
 0x1a2   :  { %1268 = vmatpush2.msra.mxu0 %v1015_v0  ;;  %1336 = vmatprep.subr.mxu1 %v1160_v13  ;;  %v974_v11 = vld [vmem:[#allocation10 + $0x138] sm:$0xff] }
 0x1a3   :  { %1269 = vmatprep.subr.mxu0 %v1012_v2  ;;  %1337 = vmatpush2.msra.mxu1 %v1159_v15  ;;  %v989_v2 = vld [vmem:[#allocation10 + $0x1b0] sm:$0xff]  ;;  %v970_v13 = vld [vmem:[#allocation10 + $0x118] sm:$0xff] }
 0x1a4   :  { %1270 = vmatpush2.msra.mxu0 %v1011_v6  ;;  %1338 = vmatprep.subr.mxu1 %v1156_v17  ;;  %v985_v6 = vld [vmem:[#allocation10 + $0x190] sm:$0xff]  ;;  %v966_v15 = vld [vmem:[#allocation10 + $0xf8] sm:$0xff] }
 0x1a5   :  { %1271 = vmatprep.subr.mxu0 %v1008_v8  ;;  %1339 = vmatpush2.msra.mxu1 %v1155_v20  ;;  %v981_v8 = vld [vmem:[#allocation10 + $0x170] sm:$0xff]  ;;  %v962_v17 = vld [vmem:[#allocation10 + $0xd8] sm:$0xff] }
 0x1a6   :  { %1272 = vmatpush2.msra.mxu0 %v1007_v10  ;;  %1340 = vmatprep.subr.mxu1 %v1152_v22  ;;  %v977_v10 = vld [vmem:[#allocation10 + $0x150] sm:$0xff]  ;;  %v954_v22 = vld [vmem:[#allocation10 + $0x98] sm:$0xff] }
 0x1a7   :  { %1273 = vmatprep.subr.mxu0 %v1004_v12  ;;  %1341 = vmatpush2.msra.mxu1 %v1151_v24  ;;  %v973_v12 = vld [vmem:[#allocation10 + $0x130] sm:$0xff] }
 0x1a8   :  { %1274 = vmatpush2.msra.mxu0 %v1003_v14  ;;  %1342 = vmatprep.subr.mxu1 %v1148_v26  ;;  %v969_v14 = vld [vmem:[#allocation10 + $0x110] sm:$0xff]  ;;  %v950_v26 = vld [vmem:[#allocation10 + $0x78] sm:$0xff] }
 0x1a9   :  { %1275 = vmatprep.subr.mxu0 %v1000_v16  ;;  %1343 = vmatpush2.msra.mxu1 %v1147_v27  ;;  %v965_v16 = vld [vmem:[#allocation10 + $0xf0] sm:$0xff] }
 0x1aa   :  { %1276 = vmatpush2.msra.mxu0 %v999_v18  ;;  %1344 = vmatprep.subr.mxu1 %v1144_v28  ;;  %v961_v18 = vld [vmem:[#allocation10 + $0xd0] sm:$0xff]  ;;  %v946_v28 = vld [vmem:[#allocation10 + $0x58] sm:$0xff] }
 0x1ab   :  { %1367 = vmatprep.subr.mxu0 %v998_v19  ;;  %1345 = vmatpush2.msra.mxu1 %v1143_v29  ;;  %v958_v19 = vld [vmem:[#allocation10 + $0xb8] sm:$0xff]  ;;  %v957_v20 = vld [vmem:[#allocation10 + $0xb0] sm:$0xff] }
 0x1ac   :  { %1346 = vmatprep.subr.mxu1 %v1140_v36  ;;  %v953_v24 = vld [vmem:[#allocation10 + $0x90] sm:$0xff]  ;;  %v942_v36 = vld [vmem:[#allocation10 + $0x38] sm:$0xff] }
 0x1ad   :  { %1347 = vmatpush2.msra.mxu1 %v1139_v30  ;;  %v949_v27 = vld [vmem:[#allocation10 + $0x70] sm:$0xff] }
 0x1ae   :  { %1348 = vmatprep.subr.mxu1 %v1136_v41  ;;  %v945_v29 = vld [vmem:[#allocation10 + $0x50] sm:$0xff]  ;;  %v938_v41 = vld [vmem:[#allocation10 + $0x18] sm:$0xff] }
 0x1af   :  { %1349 = vmatpush2.msra.mxu1 %v1135_v46  ;;  %v941_v30 = vld [vmem:[#allocation10 + $0x30] sm:$0xff] }
 0x1b0   :  { %1350 = vmatprep.subr.mxu1 %v1132_v32  ;;  %v937_v46 = vld [vmem:[#allocation10 + $0x10] sm:$0xff]  ;;  %v1062_v32 = vld [vmem:[#allocation10 + $0x3f8] sm:$0xff] }
 0x1b1   :  { %1351 = vmatpush2.msra.mxu1 %v1131_v34  ;;  %v1061_v34 = vld [vmem:[#allocation10 + $0x3f0] sm:$0xff] }
 0x1b2   :  { %1352 = vmatprep.subr.mxu1 %v1128_v37  ;;  %v1058_v37 = vld [vmem:[#allocation10 + $0x3d8] sm:$0xff] }
 0x1b3   :  { %1353 = vmatpush2.msra.mxu1 %v1127_v48  ;;  %v1057_v48 = vld [vmem:[#allocation10 + $0x3d0] sm:$0xff] }
 0x1b4   :  { %1444 = vmatprep.subr.mxu1 %v1126_v35  ;;  %v1054_v35 = vld [vmem:[#allocation10 + $0x3b8] sm:$0xff] }
 0x1e7   :  { %v685_v38 = vpop.f32.mrf.mxu0 }
 0x1e8   :  { %v686_v63 = vadd.f32 %v685_v38, %v602_v49  ;;  %v1053_v38 = vld [vmem:[#allocation10 + $0x3b0] sm:$0xff] }
 0x1e9   :  { %v687_v40 = vpop.f32.mrf.mxu0 }
 0x1ea   :  { %v688_v43 = vadd.f32 %v687_v40, %v606_v59  ;;  %v1050_v40 = vld [vmem:[#allocation10 + $0x398] sm:$0xff] }
 0x1eb   :  { %v691_v42 = vpop.f32.mrf.mxu0 }
 0x1ec   :  { %v692_v47 = vadd.f32 %v691_v42, %v602_v49  ;;  %v1049_v49 = vld [vmem:[#allocation10 + $0x390] sm:$0xff] }
 0x1ed   :  { %v693_v57 = vpop.f32.mrf.mxu0  ;;  %v1045_v42 = vld [vmem:[#allocation10 + $0x370] sm:$0xff] }
 0x1ee   :  { %v694_v52 = vadd.f32 %v693_v57, %v606_v59  ;;  %v1046_v59 = vld [vmem:[#allocation10 + $0x378] sm:$0xff] }
 0x1ef   :  { %v762_v5 = vpop.f32.mrf.mxu1  ;;  %v1034_v57 = vld [vmem:[#allocation10 + $0x318] sm:$0xff] }
 0x1f0   :  { %v2439_v44 = vadd.f32 %v762_v5, %v686_v63  ;;  %v1042_v63 = vld [vmem:[#allocation10 + $0x358] sm:$0xff]  ;;  %v1041_v5 = vld [vmem:[#allocation10 + $0x350] sm:$0xff] }
 0x1f1   :  { %v764_v45 = vpop.f32.mrf.mxu1 }
 0x1f2   :  { %v765_v4 = vadd.f32 %v764_v45, %v688_v43  ;;  %v927_v53 = vmax.f32 %v2439_v44, 0.0  ;;  %v1038_v43 = vld [vmem:[#allocation10 + $0x338] sm:$0xff]  ;;  %v1037_v45 = vld [vmem:[#allocation10 + $0x330] sm:$0xff] }
 0x1f3   :  { %v1114_v44 = vld [vmem:[#allocation10 + $0x598] sm:$0xff] }
 0x1f4   :  { %v928_v50 = vmax.f32 %v765_v4, 0.0  ;;  %v768_v51 = vpop.f32.mrf.mxu1  ;;  %v1033_v4 = vld [vmem:[#allocation10 + $0x310] sm:$0xff] }
 0x1f5   :  { %v2442_v55 = vadd.f32 %v768_v51, %v692_v47  ;;  %v1030_v47 = vld [vmem:[#allocation10 + $0x2f8] sm:$0xff] }
 0x1f6   :  { %v770_v56 = vpop.f32.mrf.mxu1  ;;  %1277 = vmatprep.mubr.f32.mxu0 %v928_v50  ;;  %v1026_v51 = vld [vmem:[#allocation10 + $0x2d8] sm:$0xff] }
 0x1f7   :  { %v2444_v60 = vadd.f32 %v770_v56, %v694_v52  ;;  %1278 = vmatmul.mubr.f32.vlgmr.msra.gmra.mxu0 %v927_v53  ;;  %v931_v1 = vmax.f32 %v2442_v55, 0.0  ;;  %v1022_v56 = vld [vmem:[#allocation10 + $0x2b8] sm:$0xff]  ;;  %v1542_v55 = vld [vmem:[#allocation11 + $0x68] sm:$0xff] }
 0x1f8   :  { %1368 = vmatpush1.msra.mxu0 %v997_v54  ;;  %v1025_v54 = vld [vmem:[#allocation10 + $0x2d0] sm:$0xff] }
 0x1f9   :  { %v932_v0 = vmax.f32 %v2444_v60, 0.0  ;;  %1369 = vmatprep.subr.mxu0 %v994_v58  ;;  %v1021_v58 = vld [vmem:[#allocation10 + $0x2b0] sm:$0xff]  ;;  %v1110_v60 = vld [vmem:[#allocation10 + $0x578] sm:$0xff] }
 0x1fa   :  { %1370 = vmatpush1.msra.mxu0 %v993_v61 }
 0x1fb   :  { %1283 = vmatprep.mubr.f32.mxu0 %v932_v0  ;;  %1371 = vmatprep.subr.mxu0 %v990_v62  ;;  %v1018_v62 = vld [vmem:[#allocation10 + $0x298] sm:$0xff] }
 0x1fc   :  { %1284 = vmatmul.mubr.f32.gmra.mxu0 %v931_v1 }
 0x1fd   :  { %1372 = vmatpush1.msra.mxu0 %v989_v2  ;;  %1431 = vmatprep.mubr.f32.mxu0 %v928_v50  ;;  %v1029_v50 = vld [vmem:[#allocation10 + $0x2f0] sm:$0xff] }
 0x1fe   :  { %1373 = vmatprep.subr.mxu0 %v986_v3  ;;  %v1017_v2 = vld [vmem:[#allocation10 + $0x290] sm:$0xff]  ;;  %v610_v3 = vrot.slane %v2433_v39, %v2384_v31 }
 0x1ff   :  { %1374 = vmatpush1.msra.mxu0 %v985_v6  ;;  %v1014_v6 = vld [vmem:[#allocation10 + $0x278] sm:$0xff] }
 0x200   :  { %1375 = vmatprep.subr.mxu0 %v982_v7  ;;  %v614_v7 = vrot.slane %v2433_v39, %v2386_v33  ;;  %v1002_v39 = vld [vmem:[#allocation10 + $0x218] sm:$0xff] }
 0x201   :  { %1376 = vmatpush1.msra.mxu0 %v981_v8  ;;  %v1013_v8 = vld [vmem:[#allocation10 + $0x270] sm:$0xff] }
 0x202   :  { %1377 = vmatprep.subr.mxu0 %v978_v9 }
 0x203   :  { %1378 = vmatpush1.msra.mxu0 %v977_v10  ;;  %v1010_v10 = vld [vmem:[#allocation10 + $0x258] sm:$0xff] }
 0x204   :  { %1379 = vmatprep.subr.mxu0 %v974_v11  ;;  %v1009_v11 = vld [vmem:[#allocation10 + $0x250] sm:$0xff] }
 0x205   :  { %1380 = vmatpush1.msra.mxu0 %v973_v12 }
 0x206   :  { %1381 = vmatprep.subr.mxu0 %v970_v13 }
 0x207   :  { %1382 = vmatpush1.msra.mxu0 %v969_v14  ;;  %v1006_v14 = vld [vmem:[#allocation10 + $0x238] sm:$0xff] }
 0x208   :  { %1383 = vmatprep.subr.mxu0 %v966_v15 }
 0x209   :  { %1384 = vmatpush1.msra.mxu0 %v965_v16  ;;  %v1005_v16 = vld [vmem:[#allocation10 + $0x230] sm:$0xff] }
 0x20a   :  { %1385 = vmatprep.subr.mxu0 %v962_v17 }
 0x20b   :  { %1386 = vmatpush1.msra.mxu0 %v961_v18 }
 0x20c   :  { %1387 = vmatprep.subr.mxu0 %v958_v19 }
 0x20d   :  { %1388 = vmatpush1.msra.mxu0 %v957_v20 }
 0x20e   :  { %1389 = vmatprep.subr.mxu0 %v954_v22  ;;  %v1001_v22 = vld [vmem:[#allocation10 + $0x210] sm:$0xff] }
 0x20f   :  { %1390 = vmatpush1.msra.mxu0 %v953_v24 }
 0x210   :  { %1391 = vmatprep.subr.mxu0 %v950_v26 }
 0x211   :  { %1392 = vmatpush1.msra.mxu0 %v949_v27 }
 0x212   :  { %1393 = vmatprep.subr.mxu0 %v946_v28 }
 0x213   :  { %1394 = vmatpush1.msra.mxu0 %v945_v29 }
 0x214   :  { %1395 = vmatprep.subr.mxu0 %v942_v36 }
 0x215   :  { %1396 = vmatpush1.msra.mxu0 %v941_v30 }
 0x216   :  { %1397 = vmatprep.subr.mxu0 %v938_v41  ;;  %v1125_v41 = vld [vmem:[#allocation10 + $0x5f0] sm:$0xff] }
 0x217   :  { %1398 = vmatpush1.msra.mxu0 %v937_v46 }
 0x218   :  { %1399 = vmatprep.subr.mxu0 %v1062_v32  ;;  %v1122_v32 = vld [vmem:[#allocation10 + $0x5d8] sm:$0xff] }
 0x219   :  { %1400 = vmatpush2.msra.mxu0 %v1061_v34  ;;  %v1121_v34 = vld [vmem:[#allocation10 + $0x5d0] sm:$0xff] }
 0x21a   :  { %1401 = vmatprep.subr.mxu0 %v1058_v37 }
 0x21b   :  { %1402 = vmatpush2.msra.mxu0 %v1057_v48  ;;  %v1118_v48 = vld [vmem:[#allocation10 + $0x5b8] sm:$0xff] }
 0x21c   :  { %1403 = vmatprep.subr.mxu0 %v1054_v35 }
 0x21d   :  { %1404 = vmatpush2.msra.mxu0 %v1053_v38  ;;  %v1117_v38 = vld [vmem:[#allocation10 + $0x5b0] sm:$0xff] }
 0x21e   :  { %1405 = vmatprep.subr.mxu0 %v1050_v40  ;;  %v1560_v40 = vld [vmem:[#allocation11 + $0xf8] sm:$0xff] }
 0x21f   :  { %1406 = vmatpush2.msra.mxu0 %v1049_v49  ;;  %v1544_v49 = vld [vmem:[#allocation11 + $0x78] sm:$0xff] }
 0x220   :  { %1407 = vmatprep.subr.mxu0 %v1046_v59  ;;  %v1559_v59 = vld [vmem:[#allocation11 + $0xf0] sm:$0xff] }
 0x221   :  { %1408 = vmatpush2.msra.mxu0 %v1045_v42  ;;  %v1106_v42 = vld [vmem:[#allocation10 + $0x558] sm:$0xff] }
 0x222   :  { %1409 = vmatprep.subr.mxu0 %v1042_v63  ;;  %v1543_v63 = vld [vmem:[#allocation11 + $0x70] sm:$0xff] }
 0x223   :  { %1410 = vmatpush2.msra.mxu0 %v1041_v5  ;;  %v1105_v5 = vld [vmem:[#allocation10 + $0x550] sm:$0xff] }
 0x224   :  { %1411 = vmatprep.subr.mxu0 %v1038_v43  ;;  %v1558_v43 = vld [vmem:[#allocation11 + $0xe8] sm:$0xff] }
 0x225   :  { %1412 = vmatpush2.msra.mxu0 %v1037_v45  ;;  %v1102_v45 = vld [vmem:[#allocation10 + $0x538] sm:$0xff] }
 0x226   :  { %1413 = vmatprep.subr.mxu0 %v1034_v57  ;;  %v1557_v57 = vld [vmem:[#allocation11 + $0xe0] sm:$0xff] }
 0x227   :  { %1414 = vmatpush2.msra.mxu0 %v1033_v4  ;;  %v1098_v4 = vld [vmem:[#allocation10 + $0x518] sm:$0xff] }
 0x228   :  { %v839_v52 = vpop.f32.mrf.mxu0  ;;  %1415 = vmatprep.subr.mxu0 %v1030_v47  ;;  %v1541_v47 = vld [vmem:[#allocation11 + $0x60] sm:$0xff] }
 0x229   :  { %1416 = vmatpush2.msra.mxu0 %v1029_v50  ;;  %v840_v12 = vadd.f32 %v839_v52, %v610_v3  ;;  %v1097_v50 = vld [vmem:[#allocation10 + $0x510] sm:$0xff]  ;;  %v1094_v52 = vld [vmem:[#allocation10 + $0x4f8] sm:$0xff] }
 0x22a   :  { %1417 = vmatprep.subr.mxu0 %v1026_v51  ;;  %v841_v61 = vpop.f32.mrf.mxu0  ;;  %v1556_v51 = vld [vmem:[#allocation11 + $0xd8] sm:$0xff] }
 0x22b   :  { %1418 = vmatpush2.msra.mxu0 %v1025_v54  ;;  %v842_v15 = vadd.f32 %v841_v61, %v614_v7  ;;  %v1540_v54 = vld [vmem:[#allocation11 + $0x58] sm:$0xff] }
 0x22c   :  { %1419 = vmatprep.subr.mxu0 %v1022_v56  ;;  %v845_v9 = vpop.f32.mrf.mxu0  ;;  %v1093_v56 = vld [vmem:[#allocation10 + $0x4f0] sm:$0xff]  ;;  %v1090_v61 = vld [vmem:[#allocation10 + $0x4d8] sm:$0xff] }
 0x22d   :  { %1420 = vmatpush2.msra.mxu0 %v1021_v58  ;;  %v846_v24 = vadd.f32 %v845_v9, %v610_v3  ;;  %v1555_v58 = vld [vmem:[#allocation11 + $0xd0] sm:$0xff]  ;;  %v1554_v3 = vld [vmem:[#allocation11 + $0xc8] sm:$0xff]  ;;  %v1553_v9 = vld [vmem:[#allocation11 + $0xc0] sm:$0xff] }
 0x22e   :  { %1421 = vmatprep.subr.mxu0 %v1018_v62  ;;  %v847_v17 = vpop.f32.mrf.mxu0  ;;  %v1539_v62 = vld [vmem:[#allocation11 + $0x50] sm:$0xff] }
 0x22f   :  { %1422 = vmatpush2.msra.mxu0 %v1017_v2  ;;  %v848_v27 = vadd.f32 %v847_v17, %v614_v7  ;;  %v1089_v2 = vld [vmem:[#allocation10 + $0x4d0] sm:$0xff]  ;;  %v1538_v7 = vld [vmem:[#allocation11 + $0x48] sm:$0xff] }
 0x230   :  { %1423 = vmatprep.subr.mxu0 %v1014_v6  ;;  %v1086_v6 = vld [vmem:[#allocation10 + $0x4b8] sm:$0xff]  ;;  %v1551_v17 = vld [vmem:[#allocation11 + $0xb0] sm:$0xff] }
 0x231   :  { %v916_v13 = vpop.f32.mrf.mxu1  ;;  %1424 = vmatpush2.msra.mxu0 %v1013_v8  ;;  %v1085_v8 = vld [vmem:[#allocation10 + $0x4b0] sm:$0xff] }
 0x232   :  { %1425 = vmatprep.subr.mxu0 %v1010_v10  ;;  %v2458_v18 = vadd.f32 %v916_v13, %v840_v12  ;;  %v1082_v10 = vld [vmem:[#allocation10 + $0x498] sm:$0xff]  ;;  %v1081_v12 = vld [vmem:[#allocation10 + $0x490] sm:$0xff] }
 0x233   :  { %v918_v19 = vpop.f32.mrf.mxu1  ;;  %1426 = vmatpush2.msra.mxu0 %v1009_v11  ;;  %v1537_v11 = vld [vmem:[#allocation11 + $0x40] sm:$0xff]  ;;  %v1552_v13 = vld [vmem:[#allocation11 + $0xb8] sm:$0xff] }
 0x234   :  { %v919_v20 = vadd.f32 %v918_v19, %v842_v15  ;;  %1427 = vmatprep.subr.mxu0 %v1006_v14  ;;  %v929_v29 = vmax.f32 %v2458_v18, 0.0  ;;  %v1078_v14 = vld [vmem:[#allocation10 + $0x478] sm:$0xff]  ;;  %v1545_v18 = vld [vmem:[#allocation11 + $0x80] sm:$0xff] }
 0x235   :  { %v922_v26 = vpop.f32.mrf.mxu1  ;;  %1428 = vmatpush2.msra.mxu0 %v1005_v16  ;;  %v1536_v15 = vld [vmem:[#allocation11 + $0x38] sm:$0xff]  ;;  %v1077_v16 = vld [vmem:[#allocation10 + $0x470] sm:$0xff] }
 0x236   :  { %v930_v28 = vmax.f32 %v919_v20, 0.0  ;;  %1429 = vmatprep.subr.mxu0 %v1002_v39  ;;  %v2461_v36 = vadd.f32 %v922_v26, %v846_v24  ;;  %v1074_v19 = vld [vmem:[#allocation10 + $0x458] sm:$0xff]  ;;  %v1535_v39 = vld [vmem:[#allocation11 + $0x30] sm:$0xff]  ;;  %v1534_v26 = vld [vmem:[#allocation11 + $0x28] sm:$0xff] }
 0x237   :  { %v924_v30 = vpop.f32.mrf.mxu1  ;;  %1430 = vmatpush2.msra.mxu0 %v1001_v22  ;;  %v1073_v20 = vld [vmem:[#allocation10 + $0x450] sm:$0xff]  ;;  %v1550_v22 = vld [vmem:[#allocation11 + $0xa8] sm:$0xff]  ;;  %v1070_v24 = vld [vmem:[#allocation10 + $0x438] sm:$0xff] }
 0x238   :  { %v2463_v46 = vadd.f32 %v924_v30, %v848_v27  ;;  %1354 = vmatprep.mubr.f32.mxu1 %v930_v28  ;;  %1432 = vmatmul.mubr.f32.vlgmr.msra.gmra.mxu0 %v927_v53  ;;  %v933_v35 = vmax.f32 %v2461_v36, 0.0  ;;  %v1113_v53 = vld [vmem:[#allocation10 + $0x590] sm:$0xff]  ;;  %v1066_v30 = vld [vmem:[#allocation10 + $0x418] sm:$0xff]  ;;  %v1589_v36 = vld [vmem:[#allocation11 + $0x1e0] sm:$0xff] }
 0x239   :  { %1355 = vmatmul.mubr.f32.vlgmr.msra.gmra.mxu1 %v929_v29  ;;  %1437 = vmatprep.mubr.f32.mxu0 %v932_v0  ;;  %v1109_v0 = vld [vmem:[#allocation10 + $0x570] sm:$0xff] }
 0x23a   :  { %v934_v37 = vmax.f32 %v2463_v46, 0.0  ;;  %1445 = vmatpush1.msra.mxu1 %v1125_v41  ;;  %1931 = vmatprep.subr.mxu0 %v1560_v40  ;;  %v1069_v27 = vld [vmem:[#allocation10 + $0x430] sm:$0xff]  ;;  %v1533_v41 = vld [vmem:[#allocation11 + $0x20] sm:$0xff]  ;;  %v1592_v46 = vld [vmem:[#allocation11 + $0x1f8] sm:$0xff] }
 0x23b   :  { %1446 = vmatprep.subr.mxu1 %v1122_v32  ;;  %1932 = vmatpush3.msra.mxu0 %v1544_v49  ;;  %v1065_v32 = vld [vmem:[#allocation10 + $0x410] sm:$0xff]  ;;  %v1174_v49 = vld [vmem:[#allocation10 + $0x778] sm:$0xff] }
 0x23c   :  { %1447 = vmatpush1.msra.mxu1 %v1121_v34  ;;  %1360 = vmatprep.mubr.f32.mxu1 %v934_v37  ;;  %v1190_v34 = vld [vmem:[#allocation10 + $0x7f8] sm:$0xff]  ;;  %v1177_v40 = vld [vmem:[#allocation10 + $0x790] sm:$0xff] }
 0x23d   :  { %1448 = vmatprep.subr.mxu1 %v1118_v48  ;;  %1361 = vmatmul.mubr.f32.gmra.mxu1 %v933_v35  ;;  %v1189_v48 = vld [vmem:[#allocation10 + $0x7f0] sm:$0xff] }
 0x23e   :  { %1438 = vmatmul.mubr.f32.gmra.mxu0 %v931_v1  ;;  %1449 = vmatpush1.msra.mxu1 %v1117_v38  ;;  %v1101_v1 = vld [vmem:[#allocation10 + $0x530] sm:$0xff]  ;;  %v1186_v38 = vld [vmem:[#allocation10 + $0x7d8] sm:$0xff] }
 0x23f   :  { %1450 = vmatprep.subr.mxu1 %v1114_v44  ;;  %1508 = vmatprep.mubr.f32.mxu1 %v930_v28  ;;  %v1549_v28 = vld [vmem:[#allocation11 + $0xa0] sm:$0xff]  ;;  %v1185_v44 = vld [vmem:[#allocation10 + $0x7d0] sm:$0xff] }
 0x240   :  { %1451 = vmatpush1.msra.mxu1 %v1113_v53  ;;  %1933 = vmatprep.subr.mxu0 %v1559_v59  ;;  %v1182_v53 = vld [vmem:[#allocation10 + $0x7b8] sm:$0xff]  ;;  %v1173_v59 = vld [vmem:[#allocation10 + $0x770] sm:$0xff] }
 0x241   :  { %1452 = vmatprep.subr.mxu1 %v1110_v60  ;;  %1934 = vmatpush3.msra.mxu0 %v1543_v63  ;;  %v1181_v60 = vld [vmem:[#allocation10 + $0x7b0] sm:$0xff] }
 0x242   :  { %1453 = vmatpush1.msra.mxu1 %v1109_v0  ;;  %1935 = vmatprep.subr.mxu0 %v1558_v43  ;;  %v1178_v0 = vld [vmem:[#allocation10 + $0x798] sm:$0xff]  ;;  %v1169_v63 = vld [vmem:[#allocation10 + $0x750] sm:$0xff] }
 0x243   :  { %1454 = vmatprep.subr.mxu1 %v1106_v42  ;;  %1936 = vmatpush3.msra.mxu0 %v1542_v55  ;;  %v1170_v42 = vld [vmem:[#allocation10 + $0x758] sm:$0xff]  ;;  %v1165_v43 = vld [vmem:[#allocation10 + $0x730] sm:$0xff] }
 0x244   :  { %1455 = vmatpush1.msra.mxu1 %v1105_v5  ;;  %1937 = vmatprep.subr.mxu0 %v1557_v57  ;;  %v1166_v5 = vld [vmem:[#allocation10 + $0x738] sm:$0xff]  ;;  %v1161_v55 = vld [vmem:[#allocation10 + $0x710] sm:$0xff] }
 0x245   :  { %1456 = vmatprep.subr.mxu1 %v1102_v45  ;;  %1938 = vmatpush3.msra.mxu0 %v1541_v47  ;;  %v1162_v45 = vld [vmem:[#allocation10 + $0x718] sm:$0xff]  ;;  %v1157_v57 = vld [vmem:[#allocation10 + $0x6f0] sm:$0xff] }
 0x246   :  { %1457 = vmatpush1.msra.mxu1 %v1101_v1  ;;  %1939 = vmatprep.subr.mxu0 %v1556_v51  ;;  %v1158_v1 = vld [vmem:[#allocation10 + $0x6f8] sm:$0xff]  ;;  %v1153_v47 = vld [vmem:[#allocation10 + $0x6d0] sm:$0xff] }
 0x247   :  { %1458 = vmatprep.subr.mxu1 %v1098_v4  ;;  %1940 = vmatpush3.msra.mxu0 %v1540_v54  ;;  %v1154_v4 = vld [vmem:[#allocation10 + $0x6d8] sm:$0xff]  ;;  %v1149_v51 = vld [vmem:[#allocation10 + $0x6b0] sm:$0xff] }
 0x248   :  { %1459 = vmatpush1.msra.mxu1 %v1097_v50  ;;  %1941 = vmatprep.subr.mxu0 %v1555_v58  ;;  %v1150_v50 = vld [vmem:[#allocation10 + $0x6b8] sm:$0xff]  ;;  %v1145_v54 = vld [vmem:[#allocation10 + $0x690] sm:$0xff] }
 0x249   :  { %1460 = vmatprep.subr.mxu1 %v1094_v52  ;;  %1942 = vmatpush3.msra.mxu0 %v1539_v62  ;;  %v1146_v52 = vld [vmem:[#allocation10 + $0x698] sm:$0xff]  ;;  %v1141_v58 = vld [vmem:[#allocation10 + $0x670] sm:$0xff] }
 0x24a   :  { %1461 = vmatpush1.msra.mxu1 %v1093_v56  ;;  %1943 = vmatprep.subr.mxu0 %v1554_v3  ;;  %v1142_v56 = vld [vmem:[#allocation10 + $0x678] sm:$0xff]  ;;  %v1137_v62 = vld [vmem:[#allocation10 + $0x650] sm:$0xff] }
 0x24b   :  { %1462 = vmatprep.subr.mxu1 %v1090_v61  ;;  %1944 = vmatpush3.msra.mxu0 %v1538_v7  ;;  %v1138_v61 = vld [vmem:[#allocation10 + $0x658] sm:$0xff]  ;;  %v1133_v3 = vld [vmem:[#allocation10 + $0x630] sm:$0xff] }
 0x24c   :  { %1463 = vmatpush1.msra.mxu1 %v1089_v2  ;;  %1945 = vmatprep.subr.mxu0 %v1553_v9  ;;  %v1134_v2 = vld [vmem:[#allocation10 + $0x638] sm:$0xff]  ;;  %v1129_v7 = vld [vmem:[#allocation10 + $0x610] sm:$0xff] }
 0x24d   :  { %1464 = vmatprep.subr.mxu1 %v1086_v6  ;;  %1946 = vmatpush3.msra.mxu0 %v1537_v11  ;;  %v1130_v6 = vld [vmem:[#allocation10 + $0x618] sm:$0xff]  ;;  %v1531_v11 = vld [vmem:[#allocation11 + $0x10] sm:$0xff] }
 0x24e   :  { %1465 = vmatpush1.msra.mxu1 %v1085_v8  ;;  %1947 = vmatprep.subr.mxu0 %v1552_v13  ;;  %v1548_v8 = vld [vmem:[#allocation11 + $0x98] sm:$0xff]  ;;  %v1530_v13 = vld [vmem:[#allocation11 + $0x8] sm:$0xff] }
 0x24f   :  { %1466 = vmatprep.subr.mxu1 %v1082_v10  ;;  %1948 = vmatpush3.msra.mxu0 %v1536_v15  ;;  %v1532_v9 = vld [vmem:[#allocation11 + $0x18] sm:$0xff]  ;;  %v1547_v10 = vld [vmem:[#allocation11 + $0x90] sm:$0xff] }
 0x250   :  { %1467 = vmatpush1.msra.mxu1 %v1081_v12  ;;  %1949 = vmatprep.subr.mxu0 %v1551_v17  ;;  %v1546_v12 = vld [vmem:[#allocation11 + $0x88] sm:$0xff]  ;;  %v1575_v15 = vld [vmem:[#allocation11 + $0x170] sm:$0xff] }
 0x251   :  { %1468 = vmatprep.subr.mxu1 %v1078_v14  ;;  %1950 = vmatpush3.msra.mxu0 %v1535_v39  ;;  %v1591_v14 = vld [vmem:[#allocation11 + $0x1f0] sm:$0xff]  ;;  %v1574_v17 = vld [vmem:[#allocation11 + $0x168] sm:$0xff]  ;;  %v1572_v39 = vld [vmem:[#allocation11 + $0x158] sm:$0xff] }
 0x252   :  { %1469 = vmatpush1.msra.mxu1 %v1077_v16  ;;  %1951 = vmatprep.subr.mxu0 %v1550_v22  ;;  %v1590_v16 = vld [vmem:[#allocation11 + $0x1e8] sm:$0xff]  ;;  %v1571_v22 = vld [vmem:[#allocation11 + $0x150] sm:$0xff] }
 0x253   :  { %1470 = vmatprep.subr.mxu1 %v1074_v19  ;;  %1952 = vmatpush3.msra.mxu0 %v1534_v26  ;;  %v1588_v19 = vld [vmem:[#allocation11 + $0x1d8] sm:$0xff]  ;;  %v1570_v26 = vld [vmem:[#allocation11 + $0x148] sm:$0xff] }
 0x254   :  { %1471 = vmatpush1.msra.mxu1 %v1073_v20  ;;  %1953 = vmatprep.subr.mxu0 %v1549_v28  ;;  %v1587_v20 = vld [vmem:[#allocation11 + $0x1d0] sm:$0xff]  ;;  %v1569_v28 = vld [vmem:[#allocation11 + $0x140] sm:$0xff] }
 0x255   :  { %1472 = vmatprep.subr.mxu1 %v1070_v24  ;;  %1954 = vmatpush3.msra.mxu0 %v1533_v41  ;;  %v1586_v24 = vld [vmem:[#allocation11 + $0x1c8] sm:$0xff]  ;;  %v1568_v41 = vld [vmem:[#allocation11 + $0x138] sm:$0xff] }
 0x256   :  { %1473 = vmatpush1.msra.mxu1 %v1069_v27  ;;  %1955 = vmatprep.subr.mxu0 %v1548_v8  ;;  %v1585_v27 = vld [vmem:[#allocation11 + $0x1c0] sm:$0xff] }
 0x257   :  { %1474 = vmatprep.subr.mxu1 %v1066_v30  ;;  %1956 = vmatpush3.msra.mxu0 %v1532_v9  ;;  %v1584_v30 = vld [vmem:[#allocation11 + $0x1b8] sm:$0xff] }
 0x258   :  { %1475 = vmatpush1.msra.mxu1 %v1065_v32  ;;  %1957 = vmatprep.subr.mxu0 %v1547_v10  ;;  %v1583_v32 = vld [vmem:[#allocation11 + $0x1b0] sm:$0xff] }
 0x259   :  { %1476 = vmatprep.subr.mxu1 %v1190_v34  ;;  %1958 = vmatpush3.msra.mxu0 %v1531_v11  ;;  %v1567_v34 = vld [vmem:[#allocation11 + $0x130] sm:$0xff] }
 0x25a   :  { %1477 = vmatpush2.msra.mxu1 %v1189_v48  ;;  %1959 = vmatprep.subr.mxu0 %v1546_v12  ;;  %v1582_v48 = vld [vmem:[#allocation11 + $0x1a8] sm:$0xff] }
 0x25b   :  { %1478 = vmatprep.subr.mxu1 %v1186_v38  ;;  %1960 = vmatpush3.msra.mxu0 %v1530_v13  ;;  %v1566_v38 = vld [vmem:[#allocation11 + $0x128] sm:$0xff] }
 0x25c   :  { %1479 = vmatpush2.msra.mxu1 %v1185_v44  ;;  %1961 = vmatprep.subr.mxu0 %v1545_v18  ;;  %v1581_v44 = vld [vmem:[#allocation11 + $0x1a0] sm:$0xff] }
 0x25d   :  { %1480 = vmatprep.subr.mxu1 %v1182_v53  ;;  %v1565_v53 = vld [vmem:[#allocation11 + $0x120] sm:$0xff] }
 0x25e   :  { %1481 = vmatpush2.msra.mxu1 %v1181_v60  ;;  %v1580_v60 = vld [vmem:[#allocation11 + $0x198] sm:$0xff] }
 0x25f   :  { %1482 = vmatprep.subr.mxu1 %v1178_v0  ;;  %v1564_v0 = vld [vmem:[#allocation11 + $0x118] sm:$0xff] }
 0x260   :  { %1483 = vmatpush2.msra.mxu1 %v1177_v40  ;;  %v1579_v40 = vld [vmem:[#allocation11 + $0x190] sm:$0xff] }
 0x261   :  { %1484 = vmatprep.subr.mxu1 %v1174_v49  ;;  %v1563_v49 = vld [vmem:[#allocation11 + $0x110] sm:$0xff] }
 0x262   :  { %1485 = vmatpush2.msra.mxu1 %v1173_v59  ;;  %v1578_v59 = vld [vmem:[#allocation11 + $0x188] sm:$0xff] }
 0x263   :  { %1486 = vmatprep.subr.mxu1 %v1170_v42  ;;  %v1562_v42 = vld [vmem:[#allocation11 + $0x108] sm:$0xff] }
 0x264   :  { %1487 = vmatpush2.msra.mxu1 %v1169_v63  ;;  %v1577_v63 = vld [vmem:[#allocation11 + $0x180] sm:$0xff] }
 0x265   :  { %1488 = vmatprep.subr.mxu1 %v1166_v5  ;;  %v1561_v5 = vld [vmem:[#allocation11 + $0x100] sm:$0xff] }
 0x266   :  { %1489 = vmatpush2.msra.mxu1 %v1165_v43 }
 0x267   :  { %1490 = vmatprep.subr.mxu1 %v1162_v45  ;;  %v1191_v45 = vld [vmem:[%s2517_s6] sm:$0xf] }
 0x268   :  { %1491 = vmatpush2.msra.mxu1 %v1161_v55  ;;  %v1204_v12 = vrot.slane %v1191_v45, %v2384_v31  ;;  %v1208_v13 = vrot.slane %v1191_v45, %v2386_v33 }
 0x269   :  { %1492 = vmatprep.subr.mxu1 %v1158_v1  ;;  %v1196_v1 = vrot.slane %v1191_v45, %v2376_v23 }
 0x26a   :  { %1493 = vmatpush2.msra.mxu1 %v1157_v57  ;;  %v1200_v57 = vrot.slane %v1191_v45, %v2378_v25 }
 0x26b   :  { %1494 = vmatprep.subr.mxu1 %v1154_v4 }
 0x26c   :  { %1495 = vmatpush2.msra.mxu1 %v1153_v47 }
 0x26d   :  { %1496 = vmatprep.subr.mxu1 %v1150_v50 }
 0x26e   :  { %1497 = vmatpush2.msra.mxu1 %v1149_v51 }
 0x26f   :  { %1498 = vmatprep.subr.mxu1 %v1146_v52 }
 0x270   :  { %1499 = vmatpush2.msra.mxu1 %v1145_v54 }
 0x271   :  { %1500 = vmatprep.subr.mxu1 %v1142_v56 }
 0x272   :  { %1501 = vmatpush2.msra.mxu1 %v1141_v58 }
 0x273   :  { %1502 = vmatprep.subr.mxu1 %v1138_v61 }
 0x274   :  { %1503 = vmatpush2.msra.mxu1 %v1137_v62 }
 0x275   :  { %1504 = vmatprep.subr.mxu1 %v1134_v2 }
 0x276   :  { %1505 = vmatpush2.msra.mxu1 %v1133_v3 }
 0x277   :  { %1506 = vmatprep.subr.mxu1 %v1130_v6 }
 0x278   :  { %1507 = vmatpush2.msra.mxu1 %v1129_v7 }
 0x279   :  { %1509 = vmatmul.mubr.f32.vlgmr.msra.gmra.mxu1 %v929_v29  ;;  %v1529_v29 = vld [vmem:[#allocation11] sm:$0xff]  ;;  %1969 = vmatprep.subr.mxu1 %v1592_v46 }
 0x27a   :  { %1514 = vmatprep.mubr.f32.mxu1 %v934_v37  ;;  %1962 = vmatpush3.msra.mxu0 %v1529_v29  ;;  %v1576_v37 = vld [vmem:[#allocation11 + $0x178] sm:$0xff] }
 0x27b   :  { %1970 = vmatpush3.msra.mxu1 %v1576_v37 }
 0x27c   :  { %1971 = vmatprep.subr.mxu1 %v1591_v14 }
 0x27d   :  { %1515 = vmatmul.mubr.f32.gmra.mxu1 %v933_v35  ;;  %v1573_v35 = vld [vmem:[#allocation11 + $0x160] sm:$0xff] }
 0x27e   :  { %1972 = vmatpush3.msra.mxu1 %v1575_v15 }
 0x27f   :  { %1973 = vmatprep.subr.mxu1 %v1590_v16 }
 0x280   :  { %1974 = vmatpush3.msra.mxu1 %v1574_v17 }
 0x281   :  { %1975 = vmatprep.subr.mxu1 %v1589_v36 }
 0x282   :  { %1976 = vmatpush3.msra.mxu1 %v1573_v35 }
 0x283   :  { %1977 = vmatprep.subr.mxu1 %v1588_v19 }
 0x284   :  { %1978 = vmatpush3.msra.mxu1 %v1572_v39 }
 0x285   :  { %1979 = vmatprep.subr.mxu1 %v1587_v20 }
 0x286   :  { %1980 = vmatpush3.msra.mxu1 %v1571_v22 }
 0x287   :  { %1981 = vmatprep.subr.mxu1 %v1586_v24 }
 0x288   :  { %1982 = vmatpush3.msra.mxu1 %v1570_v26 }
 0x289   :  { %1983 = vmatprep.subr.mxu1 %v1585_v27  ;;  %v1767_v27 = vld [vmem:[#allocation13 + $0x78] sm:$0xff] }
 0x28a   :  { %1984 = vmatpush3.msra.mxu1 %v1569_v28  ;;  %v1766_v28 = vld [vmem:[#allocation13 + $0x70] sm:$0xff]  ;;  %2025 = vmatprep.subr.mxu0 %v1767_v27 }
 0x28b   :  { %1985 = vmatprep.subr.mxu1 %v1584_v30  ;;  %v1765_v30 = vld [vmem:[#allocation13 + $0x68] sm:$0xff] }
 0x28c   :  { %1986 = vmatpush3.msra.mxu1 %v1568_v41  ;;  %v1764_v41 = vld [vmem:[#allocation13 + $0x60] sm:$0xff] }
 0x28d   :  { %1987 = vmatprep.subr.mxu1 %v1583_v32  ;;  %v1763_v32 = vld [vmem:[#allocation13 + $0x58] sm:$0xff] }
 0x28e   :  { %1988 = vmatpush3.msra.mxu1 %v1567_v34  ;;  %v1762_v34 = vld [vmem:[#allocation13 + $0x50] sm:$0xff] }
 0x28f   :  { %1989 = vmatprep.subr.mxu1 %v1582_v48  ;;  %v1761_v48 = vld [vmem:[#allocation13 + $0x48] sm:$0xff] }
 0x290   :  { %1990 = vmatpush3.msra.mxu1 %v1566_v38  ;;  %v1760_v38 = vld [vmem:[#allocation13 + $0x40] sm:$0xff] }
 0x291   :  { %1991 = vmatprep.subr.mxu1 %v1581_v44  ;;  %v1759_v44 = vld [vmem:[#allocation13 + $0x38] sm:$0xff] }
 0x292   :  { %1992 = vmatpush3.msra.mxu1 %v1565_v53  ;;  %v1758_v53 = vld [vmem:[#allocation13 + $0x30] sm:$0xff] }
 0x293   :  { %1993 = vmatprep.subr.mxu1 %v1580_v60  ;;  %v1757_v60 = vld [vmem:[#allocation13 + $0x28] sm:$0xff] }
 0x294   :  { %1994 = vmatpush3.msra.mxu1 %v1564_v0  ;;  %v1756_v0 = vld [vmem:[#allocation13 + $0x20] sm:$0xff] }
 0x295   :  { %1995 = vmatprep.subr.mxu1 %v1579_v40  ;;  %v1755_v40 = vld [vmem:[#allocation13 + $0x18] sm:$0xff] }
 0x296   :  { %1996 = vmatpush3.msra.mxu1 %v1563_v49  ;;  %v1754_v49 = vld [vmem:[#allocation13 + $0x10] sm:$0xff] }
 0x297   :  { %1997 = vmatprep.subr.mxu1 %v1578_v59  ;;  %v1753_v59 = vld [vmem:[#allocation13 + $0x8] sm:$0xff] }
 0x298   :  { %1998 = vmatpush3.msra.mxu1 %v1562_v42  ;;  %v1752_v42 = vld [vmem:[#allocation13] sm:$0xff] }
 0x299   :  { %1999 = vmatprep.subr.mxu1 %v1577_v63 }
 0x29a   :  { %2000 = vmatpush3.msra.mxu1 %v1561_v5 }
 0x2b7   :  { %v1279_v43 = vpop.f32.mrf.mxu0 }
 0x2b8   :  { %v1280_v47 = vadd.f32 %v1279_v43, %v1196_v1 }
 0x2b9   :  { %v1281_v55 = vpop.f32.mrf.mxu0 }
 0x2ba   :  { %v1282_v51 = vadd.f32 %v1281_v55, %v1200_v57  ;;  %v1929_v55 = vld [vmem:[%s2519_s8] ss:$0 sm:$0xff] }
 0x2bc   :  { %v1285_v4 = vpop.f32.mrf.mxu0 }
 0x2bd   :  { %v1286_v61 = vadd.f32 %v1285_v4, %v1196_v1 }
 0x2be   :  { %v1287_v52 = vpop.f32.mrf.mxu0 }
 0x2bf   :  { %v1288_v2 = vadd.f32 %v1287_v52, %v1200_v57 }
 0x2f8   :  { %v1433_v10 = vpop.f32.mrf.mxu0 }
 0x2f9   :  { %v1356_v50 = vpop.f32.mrf.mxu1  ;;  %v1434_v29 = vadd.f32 %v1433_v10, %v1204_v12 }
 0x2fa   :  { %v1357_v54 = vadd.f32 %v1356_v50, %v1280_v47  ;;  %v1435_v11 = vpop.f32.mrf.mxu0 }
 0x2fb   :  { %v1358_v56 = vpop.f32.mrf.mxu1  ;;  %v1436_v37 = vadd.f32 %v1435_v11, %v1208_v13 }
 0x2fc   :  { %v1359_v58 = vadd.f32 %v1358_v56, %v1282_v51  ;;  %v1521_v6 = vmax.f32 %v1357_v54, 0.0 }
 0x2fd   :  { %v1362_v62 = vpop.f32.mrf.mxu1 }
 0x2fe   :  { %v1522_v3 = vmax.f32 %v1359_v58, 0.0  ;;  %v1363_v7 = vadd.f32 %v1362_v62, %v1286_v61  ;;  %v1439_v18 = vpop.f32.mrf.mxu0 }
 0x2ff   :  { %v1364_v8 = vpop.f32.mrf.mxu1  ;;  %v1440_v36 = vadd.f32 %v1439_v18, %v1204_v12 }
 0x300   :  { %v1365_v9 = vadd.f32 %v1364_v8, %v1288_v2  ;;  %1664 = vmatprep.mubr.f32.mxu0 %v1522_v3  ;;  %v1525_v25 = vmax.f32 %v1363_v7, 0.0  ;;  %v1441_v14 = vpop.f32.mrf.mxu0  ;;  %v1930_v8 = vld [vmem:[%s2521_s10] ss:$0 sm:$0xff]  ;;  %s2271_s10 = smov [#allocation14]  }
 0x301   :  { %1665 = vmatmul.mubr.f32.vlgmr.msra.gmra.mxu0 %v1521_v6  ;;  %v1442_v19 = vadd.f32 %v1441_v14, %v1208_v13  ;;  %v2496_v6 = vand.u32 127, %v152_v21  ;;  %s1910_s3 = sshll.u32 %s2271_s10, 4  ;;  %s1911_s3 = int_to_ptr.vmem [resolvable:$true] %s1910_s3 }
 0x302   :  { %v1526_v23 = vmax.f32 %v1365_v9, 0.0  ;;  %2026 = vmatpush3.msra.mxu0 %v1767_v27  ;;  %s2229_s17 = scalar_lea.vmem %s1911_s3, 256  ;;  %p2234_p8 = scmp.lt.s32.totalorder %s1911_s3, %s1911_s3 }
 0x303   :  { %2027 = vmatprep.subr.mxu0 %v1766_v28  ;;  %vm1872_vm1 = vcmp.ge.s32.totalorder %v2496_v6, 20  ;;  %vm1873_vm2 = vcmp.lt.s32.totalorder %v2496_v6, 25  ;;  %vm1898_vm4 = vcmp.lt.s32.totalorder %v2496_v6, 20  ;;  %vm1897_vm5 = vcmp.lt.s32.totalorder %v2496_v6, 15  ;;  %p2230_p7 = scmp.ne.s32.totalorder %s1911_s3, %s2229_s17  ;;  %p2235_p9 = scmp.lt.s32.totalorder %s2229_s17, %s2229_s17 }
 0x304   :  { %1669 = vmatprep.mubr.f32.mxu0 %v1526_v23  ;;  %2028 = vmatpush3.msra.mxu0 %v1766_v28  ;;  %vm1874_vm3 = vmand %vm1872_vm1, %vm1873_vm2 }
 0x305   :  { %1670 = vmatmul.mubr.f32.gmra.mxu0 %v1525_v25  ;;  %2029 = vmatprep.subr.mxu0 %v1765_v30  ;;  %p2236_p10 = por %p2235_p9, %p2234_p8 }
 0x306   :  { %2030 = vmatpush3.msra.mxu0 %v1765_v30 }
 0x307   :  { %2031 = vmatprep.subr.mxu0 %v1764_v41  ;;  %p2237_p11 = pnand %p2236_p10, %p2230_p7 }
 0x308   :  { %2032 = vmatpush3.msra.mxu0 %v1764_v41 }
 0x309   :  { %2033 = vmatprep.subr.mxu0 %v1763_v32 }
 0x30a   :  { %2034 = vmatpush3.msra.mxu0 %v1763_v32 }
 0x30b   :  { %2035 = vmatprep.subr.mxu0 %v1762_v34 }
 0x30c   :  { %2036 = vmatpush3.msra.mxu0 %v1762_v34 }
 0x30d   :  { %2037 = vmatprep.subr.mxu0 %v1761_v48 }
 0x30e   :  { %2038 = vmatpush3.msra.mxu0 %v1761_v48 }
 0x30f   :  { %2039 = vmatprep.subr.mxu0 %v1760_v38 }
 0x310   :  { %2040 = vmatpush3.msra.mxu0 %v1760_v38 }
 0x311   :  { %2041 = vmatprep.subr.mxu0 %v1759_v44 }
 0x312   :  { %2042 = vmatpush3.msra.mxu0 %v1759_v44 }
 0x313   :  { %2043 = vmatprep.subr.mxu0 %v1758_v53 }
 0x314   :  { %2044 = vmatpush3.msra.mxu0 %v1758_v53 }
 0x315   :  { %2045 = vmatprep.subr.mxu0 %v1757_v60 }
 0x316   :  { %2046 = vmatpush3.msra.mxu0 %v1757_v60 }
 0x317   :  { %2047 = vmatprep.subr.mxu0 %v1756_v0 }
 0x318   :  { %2048 = vmatpush3.msra.mxu0 %v1756_v0 }
 0x319   :  { %2049 = vmatprep.subr.mxu0 %v1755_v40 }
 0x31a   :  { %2050 = vmatpush3.msra.mxu0 %v1755_v40 }
 0x31b   :  { %2051 = vmatprep.subr.mxu0 %v1754_v49 }
 0x31c   :  { %2052 = vmatpush3.msra.mxu0 %v1754_v49 }
 0x31d   :  { %2053 = vmatprep.subr.mxu0 %v1753_v59 }
 0x31e   :  { %2054 = vmatpush3.msra.mxu0 %v1753_v59 }
 0x31f   :  { %2055 = vmatprep.subr.mxu0 %v1752_v42 }
 0x320   :  { %2056 = vmatpush3.msra.mxu0 %v1752_v42 }
 0x339   :  { %v1510_v46 = vpop.f32.mrf.mxu1 }
 0x33a   :  { %v1511_v15 = vadd.f32 %v1510_v46, %v1434_v29 }
 0x33b   :  { %v1512_v16 = vpop.f32.mrf.mxu1 }
 0x33c   :  { %v1513_v17 = vadd.f32 %v1512_v16, %v1436_v37  ;;  %v1523_v20 = vmax.f32 %v1511_v15, 0.0 }
 0x33d   :  { %v1516_v35 = vpop.f32.mrf.mxu1 }
 0x33e   :  { %v1524_v39 = vmax.f32 %v1513_v17, 0.0  ;;  %v1517_v22 = vadd.f32 %v1516_v35, %v1440_v36 }
 0x33f   :  { %v1518_v24 = vpop.f32.mrf.mxu1 }
 0x340   :  { %v1519_v26 = vadd.f32 %v1518_v24, %v1442_v19  ;;  %1739 = vmatprep.mubr.f32.mxu1 %v1524_v39  ;;  %v1527_v33 = vmax.f32 %v1517_v22, 0.0 }
 0x341   :  { %1740 = vmatmul.mubr.f32.vlgmr.msra.gmra.mxu1 %v1523_v20 }
 0x342   :  { %v1528_v31 = vmax.f32 %v1519_v26, 0.0 }
 0x344   :  { %1744 = vmatprep.mubr.f32.mxu1 %v1528_v31 }
 0x345   :  { %1745 = vmatmul.mubr.f32.gmra.mxu1 %v1527_v33 }
 0x3c1   :  { %v1963_v63 = vpop.f32.mrf.mxu0 }
 0x3c3   :  { %v1964_v5 = vpop.f32.mrf.mxu0 }
 0x3c4   :  { %v1965_v45 = vadd.f32 %v1964_v5, %v1963_v63 }
 0x3c5   :  { %v1966_v43 = vpop.f32.mrf.mxu0 }
 0x3c6   :  { %v1667_v47 = vadd.f32 %v1965_v45, %v1929_v55 }
 0x3c7   :  { %v1967_v1 = vpop.f32.mrf.mxu0 }
 0x3c8   :  { %v1968_v50 = vadd.f32 %v1967_v1, %v1966_v43 }
 0x3ca   :  { %v1672_v58 = vadd.f32 %v1968_v50, %v1929_v55 }
 0x401   :  { %v2001_v57 = vpop.f32.mrf.mxu1 }
 0x403   :  { %v2002_v4 = vpop.f32.mrf.mxu1 }
 0x404   :  { %v2003_v51 = vadd.f32 %v2002_v4, %v2001_v57 }
 0x405   :  { %v2004_v52 = vpop.f32.mrf.mxu1 }
 0x406   :  { %v1742_v54 = vadd.f32 %v2003_v51, %v1667_v47 }
 0x407   :  { %v2005_v56 = vpop.f32.mrf.mxu1 }
 0x408   :  { %v1750_v61 = vmax.f32 %v1742_v54, 0.0  ;;  %v2006_v62 = vadd.f32 %v2005_v56, %v2004_v52 }
 0x40a   :  { %v1747_v2 = vadd.f32 %v2006_v62, %v1672_v58  ;;  %2057 = vmatprep.mubr.f32.mxu0 %v1750_v61 }
 0x40c   :  { %v1751_v3 = vmax.f32 %v1747_v2, 0.0 }
 0x40e   :  { %2058 = vmatmul.mubr.f32.vlgmr.msra.gmra.mxu0 %v1751_v3 }
 0x4ce   :  { %v2059_v7 = vpop.f32.mrf.mxu0 }
 0x4cf   :  { %v1847_v25 = vadd.f32 %v2059_v7, %v1930_v8 }
 0x4d0   :  { %v1841_v9 = vpop.f32.mrf.mxu0 }
 0x4d1   :  { %v1842_v23 = vadd.f32 %v1930_v8, %v1841_v9  ;;  %v1876_v11 = vsel %vm1874_vm3, %v1847_v25, -1e+30  ;;  %v1855_v16 = vand.u32 2147483647, %v1847_v25  ;;  %v1853_v34 = vmax.f32 %v1847_v25, 0.0 }
 0x4d3   :  { %v1875_v10 = vsel %vm1874_vm3, %v1842_v23, -1e+30  ;;  %v1854_v15 = vand.u32 2147483647, %v1842_v23  ;;  %v1857_v36 = vsub.f32 0.0, %v1855_v16  ;;  %v1852_v30 = vmax.f32 %v1842_v23, 0.0 }
 0x4d4   :  { %1877 = vmax.xlane.f32.xlu0 %v1875_v10 }
 0x4d5   :  { %v1856_v17 = vsub.f32 0.0, %v1854_v15  ;;  %v1860_v19 = vmul.f32 1.442695, %v1857_v36 }
 0x4d7   :  { %v1858_v35 = vmul.f32 1.442695, %v1856_v17 }
 0x4d8   :  { %1879 = vmax.xlane.f32.xlu0 %v1876_v11 }
 0x55d   :  { %v1878_v12 = vpop.xlane.xlu0 %1877 }
 0x55e   :  { %v1881_v21 = vsub.f32 %v1875_v10, %v1878_v12 }
 0x560   :  { %v1883_v13 = vmul.f32 1.442695, %v1881_v21 }
 0x561   :  { %v1880_v18 = vpop.xlane.xlu0 %1879 }
 0x562   :  { %2073 = vpow2.f32 %v1883_v13  ;;  %v1882_v29 = vsub.f32 %v1876_v11, %v1880_v18 }
 0x564   :  { %v1885_v46 = vmul.f32 1.442695, %v1882_v29 }
 0x566   :  { %2075 = vpow2.f32 %v1885_v46 }
 0x567   :  { %2077 = vpow2.f32 %v1858_v35 }
 0x568   :  { %2079 = vpow2.f32 %v1860_v19 }
 0x56f   :  { %v2074_v37 = vpop.eup %2073 }
 0x570   :  { %1887 = vadd.xlane.f32.xlu1 %v2074_v37 }
 0x573   :  { %v2076_v14 = vpop.eup %2075 }
 0x574   :  { %1889 = vadd.xlane.f32.xlu1 %v2076_v14  ;;  %v2078_v39 = vpop.eup %2077 }
 0x575   :  { %v1862_v20 = vadd.f32 1.0, %v2078_v39  ;;  %v2080_v22 = vpop.eup %2079 }
 0x576   :  { %v1863_v24 = vadd.f32 1.0, %v2080_v22 }
 0x577   :  { %2081 = vlog2.f32 %v1862_v20 }
 0x578   :  { %2083 = vlog2.f32 %v1863_v24 }
 0x584   :  { %v2082_v31 = vpop.eup %2081 }
 0x585   :  { %v1865_v27 = vmul.f32 0.6931472, %v2082_v31  ;;  %v2084_v28 = vpop.eup %2083 }
 0x586   :  { %v1867_v41 = vmul.f32 0.6931472, %v2084_v28 }
 0x587   :  { %v1868_v32 = vadd.f32 %v1865_v27, %v1852_v30 }
 0x588   :  { %v1869_v38 = vadd.f32 %v1867_v41, %v1853_v34 }
 0x589   :  { %v1870_v44 = vadd.f32 1e-06, %v1868_v32 }
 0x58a   :  { %v1871_v49 = vadd.f32 1e-06, %v1869_v38 }
 0x5f9   :  { %v1888_v26 = vpop.xlane.xlu1 %1887 }
 0x5fa   :  { %2085 = vrcp.f32 %v1888_v26 }
 0x5fd   :  { %v1890_v33 = vpop.xlane.xlu1 %1889 }
 0x5fe   :  { %2087 = vrcp.f32 %v1890_v33 }
 0x607   :  { %v2086_v48 = vpop.eup %2085 }
 0x608   :  { %v1895_v53 = vmul.f32 %v2086_v48, %v2074_v37 }
 0x60a   :  { %v1899_v60 = vsel %vm1898_vm4, %v1870_v44, %v1895_v53 }
 0x60b   :  { %v2088_v0 = vpop.eup %2087  ;;  %v1901_v40 = vsel %vm1897_vm5, %v1842_v23, %v1899_v60 }
 0x60c   :  { %v1896_v59 = vmul.f32 %v2088_v0, %v2076_v14  ;;  %1903 = vst [vmem:[#allocation14] sm:$0xff] %v1901_v40 }
 0x60e   :  { %v1900_v42 = vsel %vm1898_vm4, %v1871_v49, %v1896_v59 }
 0x60f   :  { %v1902_v63 = vsel %vm1897_vm5, %v1847_v25, %v1900_v42 }
 0x610   :  { %1904 = vst [vmem:[#allocation14 + $0x8] sm:$0xff] %v1902_v63 }
 0x611   :  { %2240 = shalt.err (!%p2237_p11)
}
 0x612   :  { %1916 = dma.vmem_to_hbm [thread:$0]  %s1911_s3, 256, %s2522_s11, [#allocation4], %s2265_s14, %s2265_s14, %s2266_s15  }
 0x613   :  { %2257 = dma.done.wait [#allocation4], 256  }
 0x614   :  { %2258 = vsyncadd [#allocation4], 4294967040 }
 0x615   :  { %1920 = vsyncpa [#allocation3], 1 }
 0x616   :  { %1921 = vsyncpa [#allocation6], 1 }
 0x617   :  { %1922 = vsyncpa [#allocation9], 1 }
 0x618   :  { %1923 = vsyncpa [#allocation12], 1 }
 0x619   :  { %1924 = vsyncpa [#allocation4], 1 }

</bundles_post_ra>
